<compile_context>
chip_gen: v7x
topology: tpu7x:2x2x1
jax: 0.10.0
libtpu: 0.0.40
codegen_flags: <defaults>
</compile_context>

<pallas_src>
import functools

import jax
import jax.numpy as jnp
from jax.experimental import pallas as pl
from jax.experimental.pallas import tpu as pltpu

_COMPUTE_DTYPE = jnp.bfloat16   # MXU-native on all generations; accumulate in f32
_FEATURE_DTYPE = jnp.bfloat16   # dtype of the returned pre-ELU features (HBM writeback)


def _round_up(x, m):
    return (x + m - 1) // m * m


def _probe_ok(fn):
    """Run a tiny eager pallas_call; False if it fails to lower/run."""
    try:
        jax.block_until_ready(fn())
        return True
    except Exception:  # noqa: BLE001 - any lowering/runtime failure disables the feature
        return False


@functools.lru_cache(maxsize=1)
def _expm1_supported():
    # NOTE: eagerly compiles+runs a probe kernel on first use; on a host without a TPU
    # it silently reports False and the ELU falls back to exp(x) - 1.
    def k(x_ref, o_ref):
        o_ref[...] = jnp.expm1(x_ref[...])
    return _probe_ok(lambda: pl.pallas_call(
        k, out_shape=jax.ShapeDtypeStruct((8, 128), jnp.float32))(
            jnp.zeros((8, 128), jnp.float32)))


@functools.lru_cache(maxsize=1)
def _kernel_transpose_supported():
    # Probe the in-kernel 2-D f32 transpose used for the NCL feature write.
    def k(x_ref, o_ref):
        o_ref[...] = x_ref[...].T
    return _probe_ok(lambda: pl.pallas_call(
        k, out_shape=jax.ShapeDtypeStruct((16, 64), jnp.float32))(
            jnp.zeros((64, 16), jnp.float32)))


@functools.lru_cache(maxsize=1)
def _buffered_weights_supported():
    # Probe pipeline_mode=pl.Buffered(1) (single-buffer resident weights).
    if not hasattr(pl, "Buffered"):
        return False

    def k(x_ref, o_ref):
        o_ref[...] = x_ref[...] + 1.0

    def run():
        return pl.pallas_call(
            k,
            out_shape=jax.ShapeDtypeStruct((8, 128), jnp.float32),
            grid=(2,),
            in_specs=[pl.BlockSpec((8, 128), lambda i: (0, 0),
                                   pipeline_mode=pl.Buffered(1))],
            out_specs=pl.BlockSpec((8, 128), lambda i: (0, 0)),
        )(jnp.zeros((8, 128), jnp.float32))

    return _probe_ok(run)


@functools.lru_cache(maxsize=1)
def _vmem_capacity_bytes():
    try:
        return int(getattr(pltpu.get_tpu_info(), "vmem_capacity_bytes", 128 * 2**20))
    except Exception:  # noqa: BLE001
        return 128 * 2**20


@functools.lru_cache(maxsize=1)
def _tile_l_max():
    # Smaller L-tiles on 64-MiB-VMEM parts (v7x), 512 on 128-MiB parts (v5e/v6e).
    # Must stay a multiple of 128 (it is the last dim of the NCL feature block).
    return 512 if _vmem_capacity_bytes() >= 96 * 2**20 else 256


# ----------------------------------------------------------------------------
# Fused Conv1d(k=3, pad=1, stride) + bias (+ ELU) kernel, channels-last input.
# ----------------------------------------------------------------------------
def _conv1d_k3_kernel(x_ref, h_ref, w_ref, b_ref, *out_refs, stride, tile_l, cin,
                      lout, mask_tail, emit_elu, ncl_feature, use_expm1):
    """One (batch, L-tile, Cout-tile) grid step.

    x_ref : (1, tile_l, cw) bf16   cw = cin (stride 1) / 2*cin (stride 2, paired rows)
    h_ref : (1, 1, hr, cw) bf16    halo (2 following rows / 1 preceding paired row)
    w_ref : (3*cin, cout_blk) bf16 stacked taps [W0; W1; W2]
    b_ref : (1, cout_blk) f32
    out_refs[0] : pre-ELU feature (1, cout_blk, tile_l) NCL (or (1, tile_l, cout_blk))
    out_refs[1] : optional post-ELU activation (1, tile_l, cout_blk), tail rows zeroed
    """
    x = x_ref[0]           # (tile_l, cw) bf16 -- no f32 round trip
    h = h_ref[0, 0]        # (hr, cw)     bf16

    if stride == 1:
        # Only used for the tiny-Cin (=3) first layer: output row t needs padded rows
        # t, t+1, t+2; the 2-row halo follows the tile.
        tap1 = jnp.concatenate([x[1:], h[0:1]], axis=0)
        tap2 = jnp.concatenate([x[2:], h[0:2]], axis=0)
        lhs = jnp.concatenate([x, tap1, tap2], axis=1)          # (tile_l, 3*cin)
    else:
        # Paired rows: x[g] = [orig(2g) | orig(2g+1)].  Output row g needs
        # orig(2g-1) (tap0, high half of the preceding pair) plus pair g (taps 1, 2).
        tap0 = jnp.concatenate([h[:, cin:], x[:tile_l - 1, cin:]], axis=0)
        lhs = jnp.concatenate([tap0, x], axis=1)                # (tile_l, 3*cin)

    # Single merged MXU contraction over all 3 taps, f32 accumulation.
    y = jnp.dot(lhs, w_ref[...], preferred_element_type=jnp.float32) + b_ref[...]

    if ncl_feature:
        out_refs[0][0] = y.T.astype(out_refs[0].dtype)          # NCL tile write
    else:
        out_refs[0][0] = y.astype(out_refs[0].dtype)

    if emit_elu:
        neg = jnp.minimum(y, 0.0)
        neg = jnp.expm1(neg) if use_expm1 else jnp.exp(neg) - 1.0
        act = jnp.where(y > 0.0, y, neg)                        # ELU computed once
        if mask_tail:
            # Zero rows >= lout: they are the next layer's conv right padding.
            row = (pl.program_id(1) * tile_l
                   + jax.lax.broadcasted_iota(jnp.int32, (tile_l, 1), 0))
            act = jnp.where(row < lout, act, 0.0)
        out_refs[1][0] = act.astype(out_refs[1].dtype)


def _conv1d_elu_pallas(x_cl, w, b, *, stride, lout, tile_l, n_tiles, emit_elu):
    """Fused Conv1d(k=3, pad=1, stride) + bias (+ ELU) over a channels-last activation.

    x_cl : (B, L_alloc, Cin) channels-last.  For stride==2 the rows >= true input length
           are zero (guaranteed by the producing layer) and L_alloc/2 >= n_tiles*tile_l
           (guaranteed by the chain planner).  For stride==1 (first layer, Cin==3) x_cl
           is the raw input and is zero-padded here (negligible: 3 channels).
    Returns (feature, [activation]):
      feature    : (B, Cout, lout) pre-ELU, NCL, bf16
      activation : (B, n_tiles*tile_l, Cout) post-ELU bf16, rows >= lout zeroed
    """
    B, l_alloc_in, Cin = x_cl.shape
    Cout = w.shape[0]
    assert w.shape == (Cout, Cin, 3) and stride in (1, 2)
    a_out = n_tiles * tile_l
    assert a_out >= lout and tile_l % 8 == 0

    x_cl = x_cl.astype(_COMPUTE_DTYPE)
    w_mat = jnp.transpose(w, (2, 1, 0)).reshape(3 * Cin, Cout).astype(_COMPUTE_DTYPE)
    b_row = b.reshape(1, Cout).astype(jnp.float32)

    if stride == 1:
        in_rows = a_out + 2
        x_main = jnp.pad(x_cl, ((0, 0), (1, in_rows - (l_alloc_in + 1)), (0, 0)))
        cw, hr = Cin, 2
        halo_idx = ((jnp.arange(n_tiles) * tile_l + tile_l)[:, None]
                    + jnp.arange(2)[None, :]).reshape(-1)
        halo = jnp.take(x_main, halo_idx, axis=1).reshape(B, n_tiles, 2, Cin)
        x_block = (1, tile_l, Cin)
        h_block = (1, 1, 2, Cin)
    else:
        assert l_alloc_in % 2 == 0 and l_alloc_in // 2 >= a_out
        cw, hr = 2 * Cin, 1
        x_main = x_cl.reshape(B, l_alloc_in // 2, 2 * Cin)     # free pairing reshape
        if n_tiles > 1:
            idx = jnp.arange(1, n_tiles) * tile_l - 1          # pair preceding each tile
            halo = jnp.concatenate(
                [jnp.zeros((B, 1, 2 * Cin), x_main.dtype),
                 jnp.take(x_main, idx, axis=1)], axis=1)
        else:
            halo = jnp.zeros((B, 1, 2 * Cin), x_main.dtype)    # left conv pad of tile 0
        halo = halo.reshape(B, n_tiles, 1, 2 * Cin)
        x_block = (1, tile_l, 2 * Cin)
        h_block = (1, 1, 1, 2 * Cin)

    # Cout tiling only when the (batch x L-tile) grid is too small to feed both
    # TensorCores / hide DMA (deep layers with short Lout) and Cout is large.
    n_cout = 1
    if Cout >= 512 and B * n_tiles < 4:
        for cand in (4, 3, 2):
            if Cout % cand == 0 and (Cout // cand) % 128 == 0:
                n_cout = cand
                break
    cout_blk = Cout // n_cout

    ncl_feature = _kernel_transpose_supported()
    buffered = _buffered_weights_supported() and n_cout == 1
    w_kwargs = {"pipeline_mode": pl.Buffered(1)} if buffered else {}

    in_specs = [
        pl.BlockSpec(x_block, lambda bb, i, j: (bb, i, 0)),
        pl.BlockSpec(h_block, lambda bb, i, j: (bb, i, 0, 0)),
        pl.BlockSpec((3 * Cin, cout_blk), lambda bb, i, j: (0, j), **w_kwargs),
        pl.BlockSpec((1, cout_blk), lambda bb, i, j: (0, j), **w_kwargs),
    ]

    if ncl_feature:
        feat_shape = jax.ShapeDtypeStruct((B, Cout, a_out), _FEATURE_DTYPE)
        feat_spec = pl.BlockSpec((1, cout_blk, tile_l), lambda bb, i, j: (bb, j, i))
    else:
        feat_shape = jax.ShapeDtypeStruct((B, a_out, Cout), _FEATURE_DTYPE)
        feat_spec = pl.BlockSpec((1, tile_l, cout_blk), lambda bb, i, j: (bb, i, j))
    out_shapes = [feat_shape]
    out_specs = [feat_spec]
    if emit_elu:
        out_shapes.append(jax.ShapeDtypeStruct((B, a_out, Cout), _COMPUTE_DTYPE))
        out_specs.append(
            pl.BlockSpec((1, tile_l, cout_blk), lambda bb, i, j: (bb, i, j)))

    # VMEM budget: double-buffered streams, (single-buffered) resident weights, f32 temps.
    bpe = 2
    kw = 3 * Cin
    est = (2 * (tile_l * cw + hr * cw) * bpe
           + (1 if buffered else 2) * (kw * cout_blk * bpe + cout_blk * 4)
           + 2 * cout_blk * tile_l * bpe
           + (2 * tile_l * cout_blk * bpe if emit_elu else 0)
           + tile_l * kw * bpe
           + 3 * tile_l * cout_blk * 4)
    vmem_limit = int(min(max(2 * est, 8 * 2**20), int(0.6 * _vmem_capacity_bytes())))

    out_elems = B * a_out * Cout
    feat_bpe = jnp.dtype(_FEATURE_DTYPE).itemsize
    cost = pl.CostEstimate(
        flops=int(2 * B * a_out * kw * Cout),
        transcendentals=int(out_elems if emit_elu else 0),
        bytes_accessed=int(x_main.size * bpe + halo.size * bpe + w_mat.size * bpe
                           + b_row.size * 4 + out_elems * feat_bpe
                           + (out_elems * bpe if emit_elu else 0)),
    )

    kern = functools.partial(
        _conv1d_k3_kernel, stride=stride, tile_l=tile_l, cin=Cin, lout=lout,
        mask_tail=(a_out != lout), emit_elu=emit_elu, ncl_feature=ncl_feature,
        use_expm1=_expm1_supported())

    outs = pl.pallas_call(
        kern,
        out_shape=tuple(out_shapes),
        grid=(B, n_tiles, n_cout),
        in_specs=in_specs,
        out_specs=tuple(out_specs),
        compiler_params=pltpu.CompilerParams(
            dimension_semantics=("parallel", "parallel", "parallel"),
            vmem_limit_bytes=vmem_limit),
        cost_estimate=cost,
    )(x_main, halo, w_mat, b_row)

    feat = outs[0]
    if not ncl_feature:
        feat = jnp.transpose(feat, (0, 2, 1))   # fallback: one XLA transpose (bf16)
    if a_out != lout:
        feat = feat[:, :, :lout]
    return (feat, outs[1]) if emit_elu else (feat,)


# ----------------------------------------------------------------------------
# style_encoer forward
# ----------------------------------------------------------------------------
_LAYERS = (("linear", 1), ("en1", 2), ("en2", 2), ("en3", 2))


def _plan_layers(L, tile_max):
    """Per-layer (lout, tile_l, n_tiles, alloc_rows); layer k allocates >= 2x the paired
    rows layer k+1 reads, so no activation ever needs an extra jnp.pad copy."""
    louts = [L]
    for _ in range(3):
        louts.append((louts[-1] - 1) // 2 + 1)     # conv: k=3, pad=1, stride=2
    plan = [None] * 4
    need = 0
    for k in range(3, -1, -1):
        rows = max(_round_up(louts[k], 8), need)
        t = min(tile_max, rows)
        n = -(-rows // t)
        plan[k] = (louts[k], t, n, n * t)
        need = 2 * n * t
    return plan


def init_params(key, dim):
    """Deterministic synthetic parameters (shapes from style_encoer.__init__)."""
    def conv_p(k, cin, cout):
        k1, k2 = jax.random.split(k)
        w = jax.random.normal(k1, (cout, cin, 3), jnp.float32) * 0.05
        b = jax.random.normal(k2, (cout,), jnp.float32) * 0.01
        return w, b

    ks = jax.random.split(key, 4)
    return {
        "linear": conv_p(ks[0], 3, dim),          # Conv1d(3, dim, 3)
        "en1": conv_p(ks[1], dim, dim * 2),       # EncoderBlock(dim,  2dim, stride 2)
        "en2": conv_p(ks[2], dim * 2, dim * 4),   # EncoderBlock(2dim, 4dim, stride 2)
        "en3": conv_p(ks[3], dim * 4, dim * 8),   # EncoderBlock(4dim, 8dim, stride 2)
    }


def style_encoder_forward(params, x):
    """x: (B, 3, L) NCL -> (x0, en1, en2, en3), all NCL (PyTorch convention)."""
    B, _, L = x.shape
    plan = _plan_layers(L, _tile_l_max())
    act = jnp.transpose(x, (0, 2, 1)).astype(_COMPUTE_DTYPE)   # channels-last once

    feats = []
    for idx, (name, stride) in enumerate(_LAYERS):
        w, b = params[name]
        lout, t, n, _a = plan[idx]
        emit = idx < len(_LAYERS) - 1           # en3's post-ELU activation is unused
        outs = _conv1d_elu_pallas(act, w, b, stride=stride, lout=lout,
                                  tile_l=t, n_tiles=n, emit_elu=emit)
        feats.append(outs[0])
        if emit:
            act = outs[1]
    return tuple(feats)


# ----------------------------------------------------------------------------
# Pure-JAX f32 reference (ground truth for the correctness check)
# ----------------------------------------------------------------------------
def _conv1d_ref(x, w, b, stride):
    y = jax.lax.conv_general_dilated(
        x, w, window_strides=(stride,), padding=((1, 1),),
        dimension_numbers=("NCH", "OIH", "NCH"))
    return y + b[None, :, None]


def _forward_ref(params, x):
    elu = jax.nn.elu
    w, b = params["linear"]; x0 = _conv1d_ref(x, w, b, 1)
    w, b = params["en1"];    e1 = _conv1d_ref(elu(x0), w, b, 2)
    w, b = params["en2"];    e2 = _conv1d_ref(elu(e1), w, b, 2)
    w, b = params["en3"];    e3 = _conv1d_ref(elu(e2), w, b, 2)
    return x0, e1, e2, e3


if __name__ == "__main__":
    # Prime capability probes eagerly, outside any jit tracing.
    _ = (_expm1_supported(), _kernel_transpose_supported(),
         _buffered_weights_supported(), _tile_l_max())

    fwd = jax.jit(style_encoder_forward)
    root = jax.random.PRNGKey(0)

    # Small default check + a larger-channel case that exercises the Cout-split grid
    # axis and the realistic (dim=128 -> 1024-channel en3) shapes.
    for dim, B, L in ((16, 2, 32), (128, 2, 64)):
        k_param, k_x = jax.random.split(jax.random.fold_in(root, dim))
        params = init_params(k_param, dim)
        x = jax.random.normal(k_x, (B, 3, L), jnp.float32)

        outs = jax.block_until_ready(fwd(params, x))
        refs = _forward_ref(params, x)

        assert outs[0].shape == (B, dim, L)
        assert outs[3].shape == (B, dim * 8, (L + 7) // 8)
        for o, r in zip(outs, refs):
            assert o.shape == r.shape, (o.shape, r.shape)
            err = float(jnp.max(jnp.abs(o.astype(jnp.float32) - r)))
            tol = 2e-2 + 4e-2 * float(jnp.max(jnp.abs(r)))   # bf16 MXU + bf16 outputs
            assert err <= tol, (dim, o.shape, err, tol)

    print("KERNEL_OK")
</pallas_src>

<mosaic_0001>
module attributes {stable_mosaic.version = 11 : i64} {
  func.func @k(%arg0: memref<64x16xf32, #tpu.memory_space<vmem>>, %arg1: memref<16x64xf32, #tpu.memory_space<vmem>>) attributes {dimension_semantics = [], scalar_prefetch = 0 : i64, scratch_operands = 0 : i64, tpu.core_type = #tpu.core_type<tc>} {
    %c0 = arith.constant 0 : index
    %c0_0 = arith.constant 0 : index
    %0 = vector.load %arg0[%c0, %c0_0] : memref<64x16xf32, #tpu.memory_space<vmem>>, vector<64x16xf32>
    %1 = tpu.transpose %0, [1, 0] : vector<64x16xf32> -> vector<16x64xf32>
    %c0_1 = arith.constant 0 : index
    %c0_2 = arith.constant 0 : index
    %2 = vector.load %arg1[%c0_1, %c0_2] : memref<16x64xf32, #tpu.memory_space<vmem>>, vector<16x64xf32>
    tpu.vector_store %arg1[%c0_1, %c0_2], %1 {strides = array<i32>} : memref<16x64xf32, #tpu.memory_space<vmem>>, vector<16x64xf32>,
    return
  }
}

module attributes {stable_mosaic.version = 11 : i64} {
  func.func @k(%arg0: i32, %arg1: memref<8x128xf32, #tpu.memory_space<vmem>>, %arg2: memref<8x128xf32, #tpu.memory_space<vmem>>) attributes {dimension_semantics = [#tpu.dimension_semantics<arbitrary>], iteration_bounds = array<i64: 2>, scalar_prefetch = 0 : i64, scratch_operands = 0 : i64, tpu.core_type = #tpu.core_type<tc>, window_params = [{pipeline_mode = #tpu.pipeline_mode<synchronous>, transform_indices = @transform_0, window_bounds = array<i64: 8, 128>}, {pipeline_mode = #tpu.pipeline_mode<synchronous>, transform_indices = @transform_1, window_bounds = array<i64: 8, 128>}]} {
    %c0 = arith.constant 0 : index
    %c0_0 = arith.constant 0 : index
    %0 = vector.load %arg1[%c0, %c0_0] : memref<8x128xf32, #tpu.memory_space<vmem>>, vector<8x128xf32>
    %cst = arith.constant 1.000000e+00 : f32
    %1 = vector.broadcast %cst : f32 to vector<8x128xf32>
    %2 = arith.addf %0, %1 : vector<8x128xf32>
    %c0_1 = arith.constant 0 : index
    %c0_2 = arith.constant 0 : index
    %3 = vector.load %arg2[%c0_1, %c0_2] : memref<8x128xf32, #tpu.memory_space<vmem>>, vector<8x128xf32>
    tpu.vector_store %arg2[%c0_1, %c0_2], %2 {strides = array<i32>} : memref<8x128xf32, #tpu.memory_space<vmem>>, vector<8x128xf32>,
    return
  }
  func.func @transform_0(%arg0: i32) -> (i32, i32) {
    %c0_i32 = arith.constant 0 : i32
    %c0_i32_0 = arith.constant 0 : i32
    %c0_i32_1 = arith.constant 0 : i32
    return %c0_i32, %c0_i32_0 : i32, i32
  }
  func.func @transform_1(%arg0: i32) -> (i32, i32) {
    %c0_i32 = arith.constant 0 : i32
    %c0_i32_0 = arith.constant 0 : i32
    %c0_i32_1 = arith.constant 0 : i32
    return %c0_i32, %c0_i32_0 : i32, i32
  }
}

module attributes {stable_mosaic.version = 11 : i64} {
  func.func @_conv1d_k3_kernel(%arg0: i32, %arg1: i32, %arg2: i32, %arg3: memref<1x64x3xbf16, #tpu.memory_space<vmem>>, %arg4: memref<1x1x2x3xbf16, #tpu.memory_space<vmem>>, %arg5: memref<9x16xbf16, #tpu.memory_space<vmem>>, %arg6: memref<1x16xf32, #tpu.memory_space<vmem>>, %arg7: memref<1x64x16xbf16, #tpu.memory_space<vmem>>, %arg8: memref<1x64x16xbf16, #tpu.memory_space<vmem>>) attributes {dimension_semantics = [#tpu.dimension_semantics<parallel>, #tpu.dimension_semantics<parallel>, #tpu.dimension_semantics<parallel>], iteration_bounds = array<i64: 2, 1, 1>, scalar_prefetch = 0 : i64, scratch_operands = 0 : i64, tpu.core_type = #tpu.core_type<tc>, window_params = [{transform_indices = @transform_0, window_bounds = array<i64: 1, 64, 3>}, {transform_indices = @transform_1, window_bounds = array<i64: 1, 1, 2, 3>}, {transform_indices = @transform_2, window_bounds = array<i64: 9, 16>}, {transform_indices = @transform_3, window_bounds = array<i64: 1, 16>}, {transform_indices = @transform_4, window_bounds = array<i64: 1, 64, 16>}, {transform_indices = @transform_5, window_bounds = array<i64: 1, 64, 16>}]} {
    %c0 = arith.constant 0 : index
    %c0_0 = arith.constant 0 : index
    %c0_1 = arith.constant 0 : index
    %0 = vector.load %arg3[%c0, %c0_0, %c0_1] : memref<1x64x3xbf16, #tpu.memory_space<vmem>>, vector<1x64x3xbf16>
    %1 = vector.shape_cast %0 : vector<1x64x3xbf16> to vector<64x3xbf16>
    %c0_2 = arith.constant 0 : index
    %c0_3 = arith.constant 0 : index
    %c0_4 = arith.constant 0 : index
    %c0_5 = arith.constant 0 : index
    %2 = vector.load %arg4[%c0_2, %c0_3, %c0_4, %c0_5] : memref<1x1x2x3xbf16, #tpu.memory_space<vmem>>, vector<1x1x2x3xbf16>
    %3 = vector.shape_cast %2 : vector<1x1x2x3xbf16> to vector<2x3xbf16>
    %4 = vector.extract_strided_slice %1 {offsets = [1, 0], sizes = [63, 3], strides = [1, 1]} : vector<64x3xbf16> to vector<63x3xbf16>
    %5 = vector.extract_strided_slice %3 {offsets = [0, 0], sizes = [1, 3], strides = [1, 1]} : vector<2x3xbf16> to vector<1x3xbf16>
    %6 = tpu.concatenate %4, %5 in 0 : vector<63x3xbf16>, vector<1x3xbf16> -> vector<64x3xbf16>
    %7 = vector.extract_strided_slice %1 {offsets = [2, 0], sizes = [62, 3], strides = [1, 1]} : vector<64x3xbf16> to vector<62x3xbf16>
    %8 = tpu.concatenate %7, %3 in 0 : vector<62x3xbf16>, vector<2x3xbf16> -> vector<64x3xbf16>
    %9 = tpu.concatenate %1, %6, %8 in 1 : vector<64x3xbf16>, vector<64x3xbf16>, vector<64x3xbf16> -> vector<64x9xbf16>
    %c0_6 = arith.constant 0 : index
    %c0_7 = arith.constant 0 : index
    %10 = vector.load %arg5[%c0_6, %c0_7] : memref<9x16xbf16, #tpu.memory_space<vmem>>, vector<9x16xbf16>
    %cst = arith.constant dense<0.000000e+00> : vector<64x16xf32>
    %11 = tpu.matmul %9, %10, %cst {dimension_numbers = #tpu.dot_dimension_numbers<[1], [0], [0], [1], [0, 0, 1, 1], [], []>} : vector<64x9xbf16>, vector<9x16xbf16>, vector<64x16xf32> -> vector<64x16xf32>
    %c0_8 = arith.constant 0 : index
    %c0_9 = arith.constant 0 : index
    %12 = vector.load %arg6[%c0_8, %c0_9] : memref<1x16xf32, #tpu.memory_space<vmem>>, vector<1x16xf32>
    %13 = vector.broadcast %12 : vector<1x16xf32> to vector<64x16xf32>
    %14 = arith.addf %11, %13 : vector<64x16xf32>
    %15 = arith.truncf %14 : vector<64x16xf32> to vector<64x16xbf16>
    %c0_10 = arith.constant 0 : index
    %c0_11 = arith.constant 0 : index
    %c0_12 = arith.constant 0 : index
    %16 = vector.load %arg7[%c0_10, %c0_11, %c0_12] : memref<1x64x16xbf16, #tpu.memory_space<vmem>>, vector<1x64x16xbf16>
    %17 = vector.shape_cast %16 : vector<1x64x16xbf16> to vector<64x16xbf16>
    %18 = vector.shape_cast %15 : vector<64x16xbf16> to vector<1x64x16xbf16>
    tpu.vector_store %arg7[%c0_10, %c0_11, %c0_12], %18 {strides = array<i32>} : memref<1x64x16xbf16, #tpu.memory_space<vmem>>, vector<1x64x16xbf16>,
    %cst_13 = arith.constant 0.000000e+00 : f32
    %19 = vector.broadcast %cst_13 : f32 to vector<64x16xf32>
    %20 = arith.minimumf %14, %19 : vector<64x16xf32>
    %21 = math.exp %20 : vector<64x16xf32>
    %cst_14 = arith.constant 1.000000e+00 : f32
    %22 = vector.broadcast %cst_14 : f32 to vector<64x16xf32>
    %23 = arith.subf %21, %22 : vector<64x16xf32>
    %cst_15 = arith.constant 0.000000e+00 : f32
    %24 = vector.broadcast %cst_15 : f32 to vector<64x16xf32>
    %25 = arith.cmpf ogt, %14, %24 : vector<64x16xf32>
    %26 = arith.select %25, %14, %23 : vector<64x16xi1>, vector<64x16xf32>
    %c64_i32 = arith.constant 64 : i32
    %27 = arith.muli %arg1, %c64_i32 : i32
    %28 = tpu.iota {dimensions = array<i32: 0>} : vector<64x1xi32>
    %29 = vector.broadcast %27 : i32 to vector<64x1xi32>
    %30 = arith.addi %29, %28 : vector<64x1xi32>
    %c32_i32 = arith.constant 32 : i32
    %31 = vector.broadcast %c32_i32 : i32 to vector<64x1xi32>
    %32 = arith.cmpi slt, %30, %31 : vector<64x1xi32>
    %cst_16 = arith.constant 0.000000e+00 : f32
    %33 = vector.shape_cast %32 : vector<64x1xi1> to vector<64x1xi1>
    %34 = vector.broadcast %33 : vector<64x1xi1> to vector<64x16xi1>
    %35 = vector.broadcast %cst_16 : f32 to vector<64x16xf32>
    %36 = arith.select %34, %26, %35 : vector<64x16xi1>, vector<64x16xf32>
    %37 = arith.truncf %36 : vector<64x16xf32> to vector<64x16xbf16>
    %c0_17 = arith.constant 0 : index
    %c0_18 = arith.constant 0 : index
    %c0_19 = arith.constant 0 : index
    %38 = vector.load %arg8[%c0_17, %c0_18, %c0_19] : memref<1x64x16xbf16, #tpu.memory_space<vmem>>, vector<1x64x16xbf16>
    %39 = vector.shape_cast %38 : vector<1x64x16xbf16> to vector<64x16xbf16>
    %40 = vector.shape_cast %37 : vector<64x16xbf16> to vector<1x64x16xbf16>
    tpu.vector_store %arg8[%c0_17, %c0_18, %c0_19], %40 {strides = array<i32>} : memref<1x64x16xbf16, #tpu.memory_space<vmem>>, vector<1x64x16xbf16>,
    return
  }
  func.func @transform_0(%arg0: i32, %arg1: i32, %arg2: i32) -> (i32, i32, i32) {
    %c0_i32 = arith.constant 0 : i32
    %c0_i32_0 = arith.constant 0 : i32
    return %arg0, %arg1, %c0_i32 : i32, i32, i32
  }
  func.func @transform_1(%arg0: i32, %arg1: i32, %arg2: i32) -> (i32, i32, i32, i32) {
    %c0_i32 = arith.constant 0 : i32
    %c0_i32_0 = arith.constant 0 : i32
    %c0_i32_1 = arith.constant 0 : i32
    return %arg0, %arg1, %c0_i32, %c0_i32_0 : i32, i32, i32, i32
  }
  func.func @transform_2(%arg0: i32, %arg1: i32, %arg2: i32) -> (i32, i32) {
    %c0_i32 = arith.constant 0 : i32
    %c0_i32_0 = arith.constant 0 : i32
    return %c0_i32, %arg2 : i32, i32
  }
  func.func @transform_3(%arg0: i32, %arg1: i32, %arg2: i32) -> (i32, i32) {
    %c0_i32 = arith.constant 0 : i32
    %c0_i32_0 = arith.constant 0 : i32
    return %c0_i32, %arg2 : i32, i32
  }
  func.func @transform_4(%arg0: i32, %arg1: i32, %arg2: i32) -> (i32, i32, i32) {
    %c0_i32 = arith.constant 0 : i32
    return %arg0, %arg1, %arg2 : i32, i32, i32
  }
  func.func @transform_5(%arg0: i32, %arg1: i32, %arg2: i32) -> (i32, i32, i32) {
    %c0_i32 = arith.constant 0 : i32
    return %arg0, %arg1, %arg2 : i32, i32, i32
  }
}

module attributes {stable_mosaic.version = 11 : i64} {
  func.func @_conv1d_k3_kernel(%arg0: i32, %arg1: i32, %arg2: i32, %arg3: memref<1x32x32xbf16, #tpu.memory_space<vmem>>, %arg4: memref<1x1x1x32xbf16, #tpu.memory_space<vmem>>, %arg5: memref<48x32xbf16, #tpu.memory_space<vmem>>, %arg6: memref<1x32xf32, #tpu.memory_space<vmem>>, %arg7: memref<1x32x32xbf16, #tpu.memory_space<vmem>>, %arg8: memref<1x32x32xbf16, #tpu.memory_space<vmem>>) attributes {dimension_semantics = [#tpu.dimension_semantics<parallel>, #tpu.dimension_semantics<parallel>, #tpu.dimension_semantics<parallel>], iteration_bounds = array<i64: 2, 1, 1>, scalar_prefetch = 0 : i64, scratch_operands = 0 : i64, tpu.core_type = #tpu.core_type<tc>, window_params = [{transform_indices = @transform_0, window_bounds = array<i64: 1, 32, 32>}, {transform_indices = @transform_1, window_bounds = array<i64: 1, 1, 1, 32>}, {transform_indices = @transform_2, window_bounds = array<i64: 48, 32>}, {transform_indices = @transform_3, window_bounds = array<i64: 1, 32>}, {transform_indices = @transform_4, window_bounds = array<i64: 1, 32, 32>}, {transform_indices = @transform_5, window_bounds = array<i64: 1, 32, 32>}]} {
    %c0 = arith.constant 0 : index
    %c0_0 = arith.constant 0 : index
    %c0_1 = arith.constant 0 : index
    %0 = vector.load %arg3[%c0, %c0_0, %c0_1] : memref<1x32x32xbf16, #tpu.memory_space<vmem>>, vector<1x32x32xbf16>
    %1 = vector.shape_cast %0 : vector<1x32x32xbf16> to vector<32x32xbf16>
    %c0_2 = arith.constant 0 : index
    %c0_3 = arith.constant 0 : index
    %c0_4 = arith.constant 0 : index
    %c0_5 = arith.constant 0 : index
    %2 = vector.load %arg4[%c0_2, %c0_3, %c0_4, %c0_5] : memref<1x1x1x32xbf16, #tpu.memory_space<vmem>>, vector<1x1x1x32xbf16>
    %3 = vector.shape_cast %2 : vector<1x1x1x32xbf16> to vector<1x32xbf16>
    %4 = vector.extract_strided_slice %3 {offsets = [0, 16], sizes = [1, 16], strides = [1, 1]} : vector<1x32xbf16> to vector<1x16xbf16>
    %5 = vector.extract_strided_slice %1 {offsets = [0, 16], sizes = [31, 16], strides = [1, 1]} : vector<32x32xbf16> to vector<31x16xbf16>
    %6 = tpu.concatenate %4, %5 in 0 : vector<1x16xbf16>, vector<31x16xbf16> -> vector<32x16xbf16>
    %7 = tpu.concatenate %6, %1 in 1 : vector<32x16xbf16>, vector<32x32xbf16> -> vector<32x48xbf16>
    %c0_6 = arith.constant 0 : index
    %c0_7 = arith.constant 0 : index
    %8 = vector.load %arg5[%c0_6, %c0_7] : memref<48x32xbf16, #tpu.memory_space<vmem>>, vector<48x32xbf16>
    %cst = arith.constant dense<0.000000e+00> : vector<32x32xf32>
    %9 = tpu.matmul %7, %8, %cst {dimension_numbers = #tpu.dot_dimension_numbers<[1], [0], [0], [1], [0, 0, 1, 1], [], []>} : vector<32x48xbf16>, vector<48x32xbf16>, vector<32x32xf32> -> vector<32x32xf32>
    %c0_8 = arith.constant 0 : index
    %c0_9 = arith.constant 0 : index
    %10 = vector.load %arg6[%c0_8, %c0_9] : memref<1x32xf32, #tpu.memory_space<vmem>>, vector<1x32xf32>
    %11 = vector.broadcast %10 : vector<1x32xf32> to vector<32x32xf32>
    %12 = arith.addf %9, %11 : vector<32x32xf32>
    %13 = arith.truncf %12 : vector<32x32xf32> to vector<32x32xbf16>
    %c0_10 = arith.constant 0 : index
    %c0_11 = arith.constant 0 : index
    %c0_12 = arith.constant 0 : index
    %14 = vector.load %arg7[%c0_10, %c0_11, %c0_12] : memref<1x32x32xbf16, #tpu.memory_space<vmem>>, vector<1x32x32xbf16>
    %15 = vector.shape_cast %14 : vector<1x32x32xbf16> to vector<32x32xbf16>
    %16 = vector.shape_cast %13 : vector<32x32xbf16> to vector<1x32x32xbf16>
    tpu.vector_store %arg7[%c0_10, %c0_11, %c0_12], %16 {strides = array<i32>} : memref<1x32x32xbf16, #tpu.memory_space<vmem>>, vector<1x32x32xbf16>,
    %cst_13 = arith.constant 0.000000e+00 : f32
    %17 = vector.broadcast %cst_13 : f32 to vector<32x32xf32>
    %18 = arith.minimumf %12, %17 : vector<32x32xf32>
    %19 = math.exp %18 : vector<32x32xf32>
    %cst_14 = arith.constant 1.000000e+00 : f32
    %20 = vector.broadcast %cst_14 : f32 to vector<32x32xf32>
    %21 = arith.subf %19, %20 : vector<32x32xf32>
    %cst_15 = arith.constant 0.000000e+00 : f32
    %22 = vector.broadcast %cst_15 : f32 to vector<32x32xf32>
    %23 = arith.cmpf ogt, %12, %22 : vector<32x32xf32>
    %24 = arith.select %23, %12, %21 : vector<32x32xi1>, vector<32x32xf32>
    %c32_i32 = arith.constant 32 : i32
    %25 = arith.muli %arg1, %c32_i32 : i32
    %26 = tpu.iota {dimensions = array<i32: 0>} : vector<32x1xi32>
    %27 = vector.broadcast %25 : i32 to vector<32x1xi32>
    %28 = arith.addi %27, %26 : vector<32x1xi32>
    %c16_i32 = arith.constant 16 : i32
    %29 = vector.broadcast %c16_i32 : i32 to vector<32x1xi32>
    %30 = arith.cmpi slt, %28, %29 : vector<32x1xi32>
    %cst_16 = arith.constant 0.000000e+00 : f32
    %31 = vector.shape_cast %30 : vector<32x1xi1> to vector<32x1xi1>
    %32 = vector.broadcast %31 : vector<32x1xi1> to vector<32x32xi1>
    %33 = vector.broadcast %cst_16 : f32 to vector<32x32xf32>
    %34 = arith.select %32, %24, %33 : vector<32x32xi1>, vector<32x32xf32>
    %35 = arith.truncf %34 : vector<32x32xf32> to vector<32x32xbf16>
    %c0_17 = arith.constant 0 : index
    %c0_18 = arith.constant 0 : index
    %c0_19 = arith.constant 0 : index
    %36 = vector.load %arg8[%c0_17, %c0_18, %c0_19] : memref<1x32x32xbf16, #tpu.memory_space<vmem>>, vector<1x32x32xbf16>
    %37 = vector.shape_cast %36 : vector<1x32x32xbf16> to vector<32x32xbf16>
    %38 = vector.shape_cast %35 : vector<32x32xbf16> to vector<1x32x32xbf16>
    tpu.vector_store %arg8[%c0_17, %c0_18, %c0_19], %38 {strides = array<i32>} : memref<1x32x32xbf16, #tpu.memory_space<vmem>>, vector<1x32x32xbf16>,
    return
  }
  func.func @transform_0(%arg0: i32, %arg1: i32, %arg2: i32) -> (i32, i32, i32) {
    %c0_i32 = arith.constant 0 : i32
    %c0_i32_0 = arith.constant 0 : i32
    return %arg0, %arg1, %c0_i32 : i32, i32, i32
  }
  func.func @transform_1(%arg0: i32, %arg1: i32, %arg2: i32) -> (i32, i32, i32, i32) {
    %c0_i32 = arith.constant 0 : i32
    %c0_i32_0 = arith.constant 0 : i32
    %c0_i32_1 = arith.constant 0 : i32
    return %arg0, %arg1, %c0_i32, %c0_i32_0 : i32, i32, i32, i32
  }
  func.func @transform_2(%arg0: i32, %arg1: i32, %arg2: i32) -> (i32, i32) {
    %c0_i32 = arith.constant 0 : i32
    %c0_i32_0 = arith.constant 0 : i32
    return %c0_i32, %arg2 : i32, i32
  }
  func.func @transform_3(%arg0: i32, %arg1: i32, %arg2: i32) -> (i32, i32) {
    %c0_i32 = arith.constant 0 : i32
    %c0_i32_0 = arith.constant 0 : i32
    return %c0_i32, %arg2 : i32, i32
  }
  func.func @transform_4(%arg0: i32, %arg1: i32, %arg2: i32) -> (i32, i32, i32) {
    %c0_i32 = arith.constant 0 : i32
    return %arg0, %arg1, %arg2 : i32, i32, i32
  }
  func.func @transform_5(%arg0: i32, %arg1: i32, %arg2: i32) -> (i32, i32, i32) {
    %c0_i32 = arith.constant 0 : i32
    return %arg0, %arg1, %arg2 : i32, i32, i32
  }
}

module attributes {stable_mosaic.version = 11 : i64} {
  func.func @_conv1d_k3_kernel(%arg0: i32, %arg1: i32, %arg2: i32, %arg3: memref<1x8x128xbf16, #tpu.memory_space<vmem>>, %arg4: memref<1x1x1x128xbf16, #tpu.memory_space<vmem>>, %arg5: memref<192x128xbf16, #tpu.memory_space<vmem>>, %arg6: memref<1x128xf32, #tpu.memory_space<vmem>>, %arg7: memref<1x8x128xbf16, #tpu.memory_space<vmem>>) attributes {dimension_semantics = [#tpu.dimension_semantics<parallel>, #tpu.dimension_semantics<parallel>, #tpu.dimension_semantics<parallel>], iteration_bounds = array<i64: 2, 1, 1>, scalar_prefetch = 0 : i64, scratch_operands = 0 : i64, tpu.core_type = #tpu.core_type<tc>, window_params = [{transform_indices = @transform_0, window_bounds = array<i64: 1, 8, 128>}, {transform_indices = @transform_1, window_bounds = array<i64: 1, 1, 1, 128>}, {transform_indices = @transform_2, window_bounds = array<i64: 192, 128>}, {transform_indices = @transform_3, window_bounds = array<i64: 1, 128>}, {transform_indices = @transform_4, window_bounds = array<i64: 1, 8, 128>}]} {
    %c0 = arith.constant 0 : index
    %c0_0 = arith.constant 0 : index
    %c0_1 = arith.constant 0 : index
    %0 = vector.load %arg3[%c0, %c0_0, %c0_1] : memref<1x8x128xbf16, #tpu.memory_space<vmem>>, vector<1x8x128xbf16>
    %1 = vector.shape_cast %0 : vector<1x8x128xbf16> to vector<8x128xbf16>
    %c0_2 = arith.constant 0 : index
    %c0_3 = arith.constant 0 : index
    %c0_4 = arith.constant 0 : index
    %c0_5 = arith.constant 0 : index
    %2 = vector.load %arg4[%c0_2, %c0_3, %c0_4, %c0_5] : memref<1x1x1x128xbf16, #tpu.memory_space<vmem>>, vector<1x1x1x128xbf16>
    %3 = vector.shape_cast %2 : vector<1x1x1x128xbf16> to vector<1x128xbf16>
    %4 = vector.extract_strided_slice %3 {offsets = [0, 64], sizes = [1, 64], strides = [1, 1]} : vector<1x128xbf16> to vector<1x64xbf16>
    %5 = vector.extract_strided_slice %1 {offsets = [0, 64], sizes = [7, 64], strides = [1, 1]} : vector<8x128xbf16> to vector<7x64xbf16>
    %6 = tpu.concatenate %4, %5 in 0 : vector<1x64xbf16>, vector<7x64xbf16> -> vector<8x64xbf16>
    %7 = tpu.concatenate %6, %1 in 1 : vector<8x64xbf16>, vector<8x128xbf16> -> vector<8x192xbf16>
    %c0_6 = arith.constant 0 : index
    %c0_7 = arith.constant 0 : index
    %8 = vector.load %arg5[%c0_6, %c0_7] : memref<192x128xbf16, #tpu.memory_space<vmem>>, vector<192x128xbf16>
    %cst = arith.constant dense<0.000000e+00> : vector<8x128xf32>
    %9 = tpu.matmul %7, %8, %cst {dimension_numbers = #tpu.dot_dimension_numbers<[1], [0], [0], [1], [0, 0, 1, 1], [], []>} : vector<8x192xbf16>, vector<192x128xbf16>, vector<8x128xf32> -> vector<8x128xf32>
    %c0_8 = arith.constant 0 : index
    %c0_9 = arith.constant 0 : index
    %10 = vector.load %arg6[%c0_8, %c0_9] : memref<1x128xf32, #tpu.memory_space<vmem>>, vector<1x128xf32>
    %11 = vector.broadcast %10 : vector<1x128xf32> to vector<8x128xf32>
    %12 = arith.addf %9, %11 : vector<8x128xf32>
    %13 = arith.truncf %12 : vector<8x128xf32> to vector<8x128xbf16>
    %c0_10 = arith.constant 0 : index
    %c0_11 = arith.constant 0 : index
    %c0_12 = arith.constant 0 : index
    %14 = vector.load %arg7[%c0_10, %c0_11, %c0_12] : memref<1x8x128xbf16, #tpu.memory_space<vmem>>, vector<1x8x128xbf16>
    %15 = vector.shape_cast %14 : vector<1x8x128xbf16> to vector<8x128xbf16>
    %16 = vector.shape_cast %13 : vector<8x128xbf16> to vector<1x8x128xbf16>
    tpu.vector_store %arg7[%c0_10, %c0_11, %c0_12], %16 {strides = array<i32>} : memref<1x8x128xbf16, #tpu.memory_space<vmem>>, vector<1x8x128xbf16>,
    return
  }
  func.func @transform_0(%arg0: i32, %arg1: i32, %arg2: i32) -> (i32, i32, i32) {
    %c0_i32 = arith.constant 0 : i32
    %c0_i32_0 = arith.constant 0 : i32
    return %arg0, %arg1, %c0_i32 : i32, i32, i32
  }
  func.func @transform_1(%arg0: i32, %arg1: i32, %arg2: i32) -> (i32, i32, i32, i32) {
    %c0_i32 = arith.constant 0 : i32
    %c0_i32_0 = arith.constant 0 : i32
    %c0_i32_1 = arith.constant 0 : i32
    return %arg0, %arg1, %c0_i32, %c0_i32_0 : i32, i32, i32, i32
  }
  func.func @transform_2(%arg0: i32, %arg1: i32, %arg2: i32) -> (i32, i32) {
    %c0_i32 = arith.constant 0 : i32
    %c0_i32_0 = arith.constant 0 : i32
    return %c0_i32, %arg2 : i32, i32
  }
  func.func @transform_3(%arg0: i32, %arg1: i32, %arg2: i32) -> (i32, i32) {
    %c0_i32 = arith.constant 0 : i32
    %c0_i32_0 = arith.constant 0 : i32
    return %c0_i32, %arg2 : i32, i32
  }
  func.func @transform_4(%arg0: i32, %arg1: i32, %arg2: i32) -> (i32, i32, i32) {
    %c0_i32 = arith.constant 0 : i32
    return %arg0, %arg1, %arg2 : i32, i32, i32
  }
}

module attributes {stable_mosaic.version = 11 : i64} {
  func.func @_conv1d_k3_kernel(%arg0: i32, %arg1: i32, %arg2: i32, %arg3: memref<1x16x64xbf16, #tpu.memory_space<vmem>>, %arg4: memref<1x1x1x64xbf16, #tpu.memory_space<vmem>>, %arg5: memref<96x64xbf16, #tpu.memory_space<vmem>>, %arg6: memref<1x64xf32, #tpu.memory_space<vmem>>, %arg7: memref<1x16x64xbf16, #tpu.memory_space<vmem>>, %arg8: memref<1x16x64xbf16, #tpu.memory_space<vmem>>) attributes {dimension_semantics = [#tpu.dimension_semantics<parallel>, #tpu.dimension_semantics<parallel>, #tpu.dimension_semantics<parallel>], iteration_bounds = array<i64: 2, 1, 1>, scalar_prefetch = 0 : i64, scratch_operands = 0 : i64, tpu.core_type = #tpu.core_type<tc>, window_params = [{transform_indices = @transform_0, window_bounds = array<i64: 1, 16, 64>}, {transform_indices = @transform_1, window_bounds = array<i64: 1, 1, 1, 64>}, {transform_indices = @transform_2, window_bounds = array<i64: 96, 64>}, {transform_indices = @transform_3, window_bounds = array<i64: 1, 64>}, {transform_indices = @transform_4, window_bounds = array<i64: 1, 16, 64>}, {transform_indices = @transform_5, window_bounds = array<i64: 1, 16, 64>}]} {
    %c0 = arith.constant 0 : index
    %c0_0 = arith.constant 0 : index
    %c0_1 = arith.constant 0 : index
    %0 = vector.load %arg3[%c0, %c0_0, %c0_1] : memref<1x16x64xbf16, #tpu.memory_space<vmem>>, vector<1x16x64xbf16>
    %1 = vector.shape_cast %0 : vector<1x16x64xbf16> to vector<16x64xbf16>
    %c0_2 = arith.constant 0 : index
    %c0_3 = arith.constant 0 : index
    %c0_4 = arith.constant 0 : index
    %c0_5 = arith.constant 0 : index
    %2 = vector.load %arg4[%c0_2, %c0_3, %c0_4, %c0_5] : memref<1x1x1x64xbf16, #tpu.memory_space<vmem>>, vector<1x1x1x64xbf16>
    %3 = vector.shape_cast %2 : vector<1x1x1x64xbf16> to vector<1x64xbf16>
    %4 = vector.extract_strided_slice %3 {offsets = [0, 32], sizes = [1, 32], strides = [1, 1]} : vector<1x64xbf16> to vector<1x32xbf16>
    %5 = vector.extract_strided_slice %1 {offsets = [0, 32], sizes = [15, 32], strides = [1, 1]} : vector<16x64xbf16> to vector<15x32xbf16>
    %6 = tpu.concatenate %4, %5 in 0 : vector<1x32xbf16>, vector<15x32xbf16> -> vector<16x32xbf16>
    %7 = tpu.concatenate %6, %1 in 1 : vector<16x32xbf16>, vector<16x64xbf16> -> vector<16x96xbf16>
    %c0_6 = arith.constant 0 : index
    %c0_7 = arith.constant 0 : index
    %8 = vector.load %arg5[%c0_6, %c0_7] : memref<96x64xbf16, #tpu.memory_space<vmem>>, vector<96x64xbf16>
    %cst = arith.constant dense<0.000000e+00> : vector<16x64xf32>
    %9 = tpu.matmul %7, %8, %cst {dimension_numbers = #tpu.dot_dimension_numbers<[1], [0], [0], [1], [0, 0, 1, 1], [], []>} : vector<16x96xbf16>, vector<96x64xbf16>, vector<16x64xf32> -> vector<16x64xf32>
    %c0_8 = arith.constant 0 : index
    %c0_9 = arith.constant 0 : index
    %10 = vector.load %arg6[%c0_8, %c0_9] : memref<1x64xf32, #tpu.memory_space<vmem>>, vector<1x64xf32>
    %11 = vector.broadcast %10 : vector<1x64xf32> to vector<16x64xf32>
    %12 = arith.addf %9, %11 : vector<16x64xf32>
    %13 = arith.truncf %12 : vector<16x64xf32> to vector<16x64xbf16>
    %c0_10 = arith.constant 0 : index
    %c0_11 = arith.constant 0 : index
    %c0_12 = arith.constant 0 : index
    %14 = vector.load %arg7[%c0_10, %c0_11, %c0_12] : memref<1x16x64xbf16, #tpu.memory_space<vmem>>, vector<1x16x64xbf16>
    %15 = vector.shape_cast %14 : vector<1x16x64xbf16> to vector<16x64xbf16>
    %16 = vector.shape_cast %13 : vector<16x64xbf16> to vector<1x16x64xbf16>
    tpu.vector_store %arg7[%c0_10, %c0_11, %c0_12], %16 {strides = array<i32>} : memref<1x16x64xbf16, #tpu.memory_space<vmem>>, vector<1x16x64xbf16>,
    %cst_13 = arith.constant 0.000000e+00 : f32
    %17 = vector.broadcast %cst_13 : f32 to vector<16x64xf32>
    %18 = arith.minimumf %12, %17 : vector<16x64xf32>
    %19 = math.exp %18 : vector<16x64xf32>
    %cst_14 = arith.constant 1.000000e+00 : f32
    %20 = vector.broadcast %cst_14 : f32 to vector<16x64xf32>
    %21 = arith.subf %19, %20 : vector<16x64xf32>
    %cst_15 = arith.constant 0.000000e+00 : f32
    %22 = vector.broadcast %cst_15 : f32 to vector<16x64xf32>
    %23 = arith.cmpf ogt, %12, %22 : vector<16x64xf32>
    %24 = arith.select %23, %12, %21 : vector<16x64xi1>, vector<16x64xf32>
    %c16_i32 = arith.constant 16 : i32
    %25 = arith.muli %arg1, %c16_i32 : i32
    %26 = tpu.iota {dimensions = array<i32: 0>} : vector<16x1xi32>
    %27 = vector.broadcast %25 : i32 to vector<16x1xi32>
    %28 = arith.addi %27, %26 : vector<16x1xi32>
    %c8_i32 = arith.constant 8 : i32
    %29 = vector.broadcast %c8_i32 : i32 to vector<16x1xi32>
    %30 = arith.cmpi slt, %28, %29 : vector<16x1xi32>
    %cst_16 = arith.constant 0.000000e+00 : f32
    %31 = vector.shape_cast %30 : vector<16x1xi1> to vector<16x1xi1>
    %32 = vector.broadcast %31 : vector<16x1xi1> to vector<16x64xi1>
    %33 = vector.broadcast %cst_16 : f32 to vector<16x64xf32>
    %34 = arith.select %32, %24, %33 : vector<16x64xi1>, vector<16x64xf32>
    %35 = arith.truncf %34 : vector<16x64xf32> to vector<16x64xbf16>
    %c0_17 = arith.constant 0 : index
    %c0_18 = arith.constant 0 : index
    %c0_19 = arith.constant 0 : index
    %36 = vector.load %arg8[%c0_17, %c0_18, %c0_19] : memref<1x16x64xbf16, #tpu.memory_space<vmem>>, vector<1x16x64xbf16>
    %37 = vector.shape_cast %36 : vector<1x16x64xbf16> to vector<16x64xbf16>
    %38 = vector.shape_cast %35 : vector<16x64xbf16> to vector<1x16x64xbf16>
    tpu.vector_store %arg8[%c0_17, %c0_18, %c0_19], %38 {strides = array<i32>} : memref<1x16x64xbf16, #tpu.memory_space<vmem>>, vector<1x16x64xbf16>,
    return
  }
  func.func @transform_0(%arg0: i32, %arg1: i32, %arg2: i32) -> (i32, i32, i32) {
    %c0_i32 = arith.constant 0 : i32
    %c0_i32_0 = arith.constant 0 : i32
    return %arg0, %arg1, %c0_i32 : i32, i32, i32
  }
  func.func @transform_1(%arg0: i32, %arg1: i32, %arg2: i32) -> (i32, i32, i32, i32) {
    %c0_i32 = arith.constant 0 : i32
    %c0_i32_0 = arith.constant 0 : i32
    %c0_i32_1 = arith.constant 0 : i32
    return %arg0, %arg1, %c0_i32, %c0_i32_0 : i32, i32, i32, i32
  }
  func.func @transform_2(%arg0: i32, %arg1: i32, %arg2: i32) -> (i32, i32) {
    %c0_i32 = arith.constant 0 : i32
    %c0_i32_0 = arith.constant 0 : i32
    return %c0_i32, %arg2 : i32, i32
  }
  func.func @transform_3(%arg0: i32, %arg1: i32, %arg2: i32) -> (i32, i32) {
    %c0_i32 = arith.constant 0 : i32
    %c0_i32_0 = arith.constant 0 : i32
    return %c0_i32, %arg2 : i32, i32
  }
  func.func @transform_4(%arg0: i32, %arg1: i32, %arg2: i32) -> (i32, i32, i32) {
    %c0_i32 = arith.constant 0 : i32
    return %arg0, %arg1, %arg2 : i32, i32, i32
  }
  func.func @transform_5(%arg0: i32, %arg1: i32, %arg2: i32) -> (i32, i32, i32) {
    %c0_i32 = arith.constant 0 : i32
    return %arg0, %arg1, %arg2 : i32, i32, i32
  }
}

</mosaic_0001>

<bundles_post_ra>
// kernel: tpu_custom_call.1
= control target key start
LH: loop header
LB: loop body
LE: loop exit
PB: predicated region body
PF: predicated region fallthrough
CT: control target
= control target key end

     0   :  { %s145_s0 = inlined_call_operand.vmem [shape: f32[64,16], index: 0, kind: input, shape index: {}]   ;;  %s146_s1 = inlined_call_operand.hbm [shape: f32[16,64], index: 1, kind: output, shape index: {}]  }
   0x1   :  { %v9_v0 = vld [vmem:[%s145_s0] sm:$0xff]  ;;  %v10_v1 = vld [vmem:[%s145_s0 + $0x8] sm:$0xff] }
   0x2   :  { %17 = vxpose.xlu0.b32.start [1/8] (short) (narrow) %v9_v0, 16 }
   0x3   :  { %6 = vsyncpa [#allocation3], 0  ;;  %v11_v2 = vld [vmem:[%s145_s0 + $0x10] sm:$0xff]  ;;  %v12_v3 = vld [vmem:[%s145_s0 + $0x18] sm:$0xff]  ;;  %vm49_vm0 = vcmask 523264   ;;  %s96_s22 = smov [#allocation2]  }
   0x4   :  { %v13_v4 = vld [vmem:[%s145_s0 + $0x20] sm:$0xff]  ;;  %v14_v5 = vld [vmem:[%s145_s0 + $0x28] sm:$0xff]  ;;  %v15_v6 = vld [vmem:[%s145_s0 + $0x30] sm:$0xff]  ;;  %s57_s23 = sshll.u32 %s96_s22, 4  ;;  %s58_s23 = int_to_ptr.vmem [resolvable:$true] %s57_s23 }
   0x5   :  { %v16_v7 = vld [vmem:[%s145_s0 + $0x38] sm:$0xff]  ;;  %s72_s24 = scalar_lea.vmem %s58_s23, 256  ;;  %p77_p1 = scmp.lt.s32.totalorder %s58_s23, %s58_s23 }
   0x6   :  { %18 = vxpose.xlu0.b32.cont [2/8] (short) (narrow) %v10_v1, 16  ;;  %p73_p0 = scmp.ne.s32.totalorder %s58_s23, %s72_s24  ;;  %p78_p2 = scmp.lt.s32.totalorder %s72_s24, %s72_s24 }
   0x8   :  { %p79_p3 = por %p78_p2, %p77_p1 }
   0xa   :  { %19 = vxpose.xlu0.b32.cont [3/8] (short) (narrow) %v11_v2, 16  ;;  %p80_p4 = pnand %p79_p3, %p73_p0 }
   0xe   :  { %20 = vxpose.xlu0.b32.cont [4/8] (short) (narrow) %v12_v3, 16 }
  0x12   :  { %21 = vxpose.xlu0.b32.cont [5/8] (short) (narrow) %v13_v4, 16 }
  0x16   :  { %22 = vxpose.xlu0.b32.cont [6/8] (short) (narrow) %v14_v5, 16 }
  0x1a   :  { %23 = vxpose.xlu0.b32.cont [7/8] (short) (narrow) %v15_v6, 16 }
  0x1e   :  { %24 = vxpose.xlu0.b32.end [8/8] (short) (narrow) %v16_v7, 16 }
  0x82   :  { %v33_v8 = vpop.trf.xlu0 }
  0x83   :  { %50 = vst.msk [vmem:[#allocation2] sm:$0xff] %vm49_vm0, %v33_v8 }
  0x86   :  { %v34_v9 = vpop.trf.xlu0 }
  0x87   :  { %51 = vst.msk [vmem:[#allocation2 + $0x8] sm:$0xff] %vm49_vm0, %v34_v9 }
  0x88   :  { %83 = shalt.err (!%p80_p4)
}
  0x89   :  { %s84_s0 = scalar_lea.hbm %s146_s1, 256 }
  0x8a   :  { %p85_p5 = scmp.ne.s32.totalorder %s146_s1, %s84_s0  ;;  %p88_p6 = scmp.lt.u32.totalorder %s84_s0, %s146_s1 }
  0x8c   :  { %p90_p7 = pnand %p88_p6, %p85_p5 }
  0x8e   :  { %93 = shalt.err (!%p90_p7)
}
  0x8f   :  { %s97_s2 = smov 128   ;;  %s98_s3 = smov 8  }
  0x90   :  { %63 = dma.vmem_to_hbm [thread:$0]  %s58_s23, 256, %s146_s1, [#allocation3], %s97_s2, %s97_s2, %s98_s3  }
  0x91   :  { %94 = dma.done.wait [#allocation3], 256  }
  0x92   :  { %95 = vsyncadd [#allocation3], 4294967040 }
  0x93   :  { %67 = vsyncpa [#allocation3], 1 }

// kernel: tpu_custom_call.1
= control target key start
LH: loop header
LB: loop body
LE: loop exit
PB: predicated region body
PF: predicated region fallthrough
CT: control target
= control target key end

     0   :  { %6 = vsyncpa [#allocation3], 0  ;;  %s341_s0 = inlined_call_operand.hbm [shape: f32[8,128], index: 0, kind: input, shape index: {}]   ;;  %s342_s1 = inlined_call_operand.hbm [shape: f32[8,128], index: 1, kind: output, shape index: {}]  }
   0x1   :  { %7 = vsyncpa [#allocation4], 0  ;;  %s262_s6 = smov 0  }
   0x2 LB: > { %s145_s7 = sadd.s32 4294967295, %s248_s6   ;;  %p146_p0 = scmp.ge.s32.totalorder %s248_s6, 1  ;;  %s248_s6 = sphi %s262_s6, %s13_s6  }
   0x3   : > { %p60_p1 = scmp.lt.s32.totalorder %s248_s6, 3  ;;  %p276_p3 = scmp.eq.s32.totalorder %s145_s7, 0 }
   0x4   : > { %s250_s10 = smov [#allocation2]   ;;  %s180_s15 = scalar_lea.hbm %s341_s0, 128 }
   0x5   : > { %p270_p2 = pnand %p146_p0, %p60_p1  ;;  %s73_s11 = sshll.u32 %s250_s10, 4  ;;  %s74_s11 = int_to_ptr.vmem [resolvable:$true] %s73_s11 }
   0x6   : > { %s347_s9 = scalar_select %p276_p3, 1, 0 }
   0x7   : > { %s346_s8 = scalar_select %p270_p2, 1, 0 }
   0x8   : > { %p162_p4 = pneg %p270_p2  ;;  %p181_p6 = scmp.ne.s32.totalorder %s341_s0, %s180_s15 }
   0x9   : > { %p187_p10 = scmp.lt.u32.totalorder %s180_s15, %s341_s0 }
   0xa   : > { %p284_p5 = pnand %p276_p3, %p162_p4 }
   0xc   : > { %p182_p7 = pneg %p284_p5 }
   0xe   : > { %p183_p8 = pnand %p182_p7, %p181_p6 }
  0x10   : > { %p184_p9 = pneg %p183_p8 }
  0x12   : > { %p189_p11 = pnand %p187_p10, %p184_p9 }
  0x14   : > { %192 = shalt.err (!%p189_p11)
}
  0x15   : > { %s193_s20 = scalar_lea.vmem %s74_s11, 128  ;;  %p201_p1 = scmp.lt.s32.totalorder %s74_s11, %s74_s11 }
  0x16   : > { %p194_p12 = scmp.ne.s32.totalorder %s74_s11, %s193_s20  ;;  %p202_p4 = scmp.lt.s32.totalorder %s193_s20, %s193_s20 }
  0x18   : > { %p196_p13 = pnand %p194_p12, %p182_p7  ;;  %p203_p3 = por %p202_p4, %p201_p1 }
  0x1a   : > { %p197_p0 = pneg %p196_p13 }
  0x1c   : > { %p204_p2 = pnand %p203_p3, %p197_p0 }
  0x1e   : > { %207 = shalt.err (!%p204_p2)
}
  0x1f   : > { %165 = dma.hbm_to_vmem [thread:$0]  (!%p284_p5), %s341_s0, 128, %s74_s11, [#allocation3]  }
  0x20   : > { %p349_p6 = scmp.ne.s32.totalorder %s346_s8, 0 }
  0x21   : > { %p350_p8 = scmp.ne.s32.totalorder (!%p349_p6), %s347_s9, 0 }
  0x22   : > { %86 = sbr.rel (%p349_p6) target bundleno = 67 (0x43), region = 24 }
  0x29   : > { %239 = dma.done.wait (%p350_p8), [#allocation3], 128  }
  0x2a   : > { %241 = vsyncadd (%p350_p8), [#allocation3], 4294967168  ;;  %s251_s23 = smov [#allocation5]   ;;  %v96_v0 = vld [vmem:[#allocation2] sm:$0xff]  ;;  %p312_p2 = scmp.eq.s32.totalorder %s145_s7, 1 }
  0x2b   : > { %s106_s24 = sshll.u32 %s251_s23, 4  ;;  %v97_v1 = vadd.f32 1.0, %v96_v0  ;;  %s107_s24 = int_to_ptr.vmem [resolvable:$true] %s106_s24 }
  0x2c   : > { %s208_s26 = scalar_lea.vmem %s107_s24, 128  ;;  %p215_p9 = scmp.lt.s32.totalorder %s107_s24, %s107_s24 }
  0x2d   : > { %98 = vst [vmem:[#allocation5] sm:$0xff] %v97_v1  ;;  %p209_p3 = scmp.ne.s32.totalorder %s107_s24, %s208_s26  ;;  %p216_p10 = scmp.lt.s32.totalorder %s208_s26, %s208_s26 }
  0x2f   : > { %p210_p5 = pnand %p209_p3, %p312_p2  ;;  %p217_p11 = por %p216_p10, %p215_p9 }
  0x31   : > { %p211_p7 = pneg %p210_p5 }
  0x33   : > { %p218_p12 = pnand %p217_p11, %p211_p7 }
  0x35   : > { %221 = shalt.err (!%p218_p12)
}
  0x36   : > { %s222_s29 = scalar_lea.hbm %s342_s1, 128 }
  0x37   : > { %p223_p13 = scmp.ne.s32.totalorder %s342_s1, %s222_s29  ;;  %p228_p4 = scmp.lt.u32.totalorder %s222_s29, %s342_s1 }
  0x39   : > { %p224_p0 = pnand %p223_p13, %p312_p2 }
  0x3b   : > { %p225_p1 = pneg %p224_p0 }
  0x3d   : > { %p230_p6 = pnand %p228_p4, %p225_p1 }
  0x3f   : > { %233 = shalt.err (!%p230_p6)
}
  0x40   : > { %159 = dma.vmem_to_hbm [thread:$0]  (%p312_p2), %s107_s24, 128, %s342_s1, [#allocation4]  }
  0x41   : > { %243 = dma.done.wait (%p312_p2), [#allocation4], 128  }
  0x42   : > { %245 = vsyncadd (%p312_p2), [#allocation4], 4294967168 }
  0x43 PF: > { %s13_s6 = sadd.s32 1, %s248_s6  }
  0x44   : > { %p10_p8 = scmp.ge.s32.totalorder %s13_s6, 4  }
  0x46   :  { %12 = sbr.rel (!%p10_p8) target bundleno = 2 (0x2), region = 53 }
  0x4d   :  { %119 = vsyncpa [#allocation3], 1 }
  0x4e   :  { %121 = vsyncpa [#allocation3 + $0x1], 1 }
  0x4f   :  { %122 = vsyncpa [#allocation4], 1 }
  0x50   :  { %124 = vsyncpa [#allocation4 + $0x1], 1 }

// kernel: style_encoder_forward.7
= control target key start
LH: loop header
LB: loop body
LE: loop exit
PB: predicated region body
PF: predicated region fallthrough
CT: control target
= control target key end

     0   :  { %s713_s15 = smov 0   ;;  %s715_s16 = smov 0   ;;  %s796_s0 = inlined_call_operand.vmem [shape: bf16[2,8,128], index: 0, kind: input, shape index: {}]   ;;  %s797_s1 = inlined_call_operand.vmem [shape: bf16[2,1,1,128], index: 1, kind: input, shape index: {}]   ;;  %s798_s2 = inlined_call_operand.vmem [shape: bf16[192,128], index: 2, kind: input, shape index: {}]   ;;  %s799_s3 = inlined_call_operand.vmem [shape: f32[1,128], index: 3, kind: input, shape index: {}]   ;;  %s800_s4 = inlined_call_operand.vmem [shape: bf16[2,8,128], index: 4, kind: output, shape index: {}]  }
   0x1   :  { %s717_s17 = smov 0  }
   0x2 LB: > { %s33_s18 = sadd.s32 1, %s680_s16  ;;  %p603_p0 = scmp.ge.s32.totalorder %s684_s17, 1  ;;  %s684_s17 = sphi %s717_s17, %s14_s17   ;;  %s680_s16 = sphi %s715_s16, %s802_s16   ;;  %s676_s15 = sphi %s713_s15, %s801_s15  }
   0x3   : > { %p35_p1 = scmp.ge.s32.totalorder %s33_s18, 2  ;;  %p219_p2 = scmp.lt.s32.totalorder %s684_s17, 3 }
   0x5   : > { %s804_s18 = smov (%p35_p1, %s33_s18), 0  ;;  %p220_p3 = pnand %p603_p0, %p219_p2 }
   0x6   : > { %p265_p4 = scmp.lt.s32.totalorder (!%p220_p3), %s676_s15, 1  ;;  %v686_v0 = vmov (!%p220_p3), 0   ;;  %v650_v1 = vld [vmem:[%s798_s2] sm:$0xff] (!%p220_p3)   ;;  %v651_v2 = vld [vmem:[%s798_s2 + $0x8] sm:$0xff] (!%p220_p3)   ;;  %vm309_vm0 = vcmask (!%p220_p3), 1040384   ;;  %v652_v6 = vld [vmem:[%s798_s2 + $0x10] sm:$0xff] (!%p220_p3)  }
   0x7   : > { %223 = sbr.rel (%p220_p3) target bundleno = 362 (0x16a), region = 36  ;;  %428 = vmatprep.subr.bf16.mxu0 (!%p220_p3), %v686_v0  ;;  %vm310_vm1 = vsmask.f32 (!%p220_p3), 256  ;;  %v653_v10 = vld [vmem:[%s798_s2 + $0x18] sm:$0xff] (!%p220_p3)   ;;  %s687_s8 = smov (!%p220_p3), 64   ;;  %v654_v12 = vld [vmem:[%s798_s2 + $0x20] sm:$0xff] (!%p220_p3)  }
   0x8   : > { %429 = vmatpush1.bf16.msra.mxu0 (!%p220_p3), %v650_v1  ;;  %vm311_vm2 = vmand (!%p220_p3), %vm309_vm0, %vm310_vm1  ;;  %v655_v13 = vld [vmem:[%s798_s2 + $0x28] sm:$0xff] (!%p220_p3)   ;;  %v656_v14 = vld [vmem:[%s798_s2 + $0x30] sm:$0xff] (!%p220_p3)   ;;  %vm318_vm3 = vcmask (!%p220_p3), 523264  }
   0x9   : > { %430 = vmatprep.subr.bf16.mxu0 (!%p220_p3), %v686_v0  ;;  %v657_v15 = vld [vmem:[%s798_s2 + $0x38] sm:$0xff] (!%p220_p3)   ;;  %v658_v16 = vld [vmem:[%s798_s2 + $0x40] sm:$0xff] (!%p220_p3)   ;;  %v659_v17 = vld [vmem:[%s798_s2 + $0x48] sm:$0xff] (!%p220_p3)  }
   0xa   : > { %v660_v18 = vld [vmem:[%s798_s2 + $0x50] sm:$0xff] (!%p220_p3)   ;;  %v661_v19 = vld [vmem:[%s798_s2 + $0x58] sm:$0xff] (!%p220_p3)   ;;  %v607_v23 = vld [vmem:[%s799_s3] ss:$0 sm:$0xff] (!%p220_p3) }
   0xc   : > { %431 = vmatpush1.bf16.msra.mxu0 (!%p220_p3), %v651_v2 }
   0xd   : > { %432 = vmatprep.subr.bf16.mxu0 (!%p220_p3), %v686_v0 }
   0xe   : > { %s806_s15 = smov (!%p265_p4, %s676_s15), 1 }
   0xf   : > { %s604_s21 = sshll.u32 %s806_s15, 2  ;;  %s277_s29 = scalar_lea.vmem %s797_s1, %s806_s15 }
  0x10   : > { %s271_s26 = scalar_lea.vmem %s796_s0, %s604_s21  ;;  %v297_v8 = vld [vmem:[%s277_s29] sm:$0x1]  ;;  %433 = vmatpush1.bf16.msra.mxu0 %v652_v6 }
  0x11   : > { %v649_v3 = vld [vmem:[%s271_s26] ss:$0 sps:$4 sm:$0xff]   ;;  %434 = vmatprep.subr.bf16.mxu0 %v686_v0 }
  0x12   : > { %v302_v4 = vshrl.u32 %v649_v3, 16  ;;  %v305_v5 = vshll.u32 %v649_v3, 16 }
  0x14   : > { %v304_v7 = vrot.slane %v302_v4, 7  ;;  %435 = vmatpush1.bf16.msra.mxu0 %v653_v10 }
  0x15   : > { %436 = vmatprep.subr.bf16.mxu0 %v686_v0 }
  0x16   : > { %v307_v9 = vor.u32 %v305_v5, %v304_v7 }
  0x18   : > { %v312_v11 = vsel %vm311_vm2, %v297_v8, %v307_v9  ;;  %437 = vmatpush1.bf16.msra.mxu0 %v654_v12 }
  0x19   : > { %314 = vrot.lane.b32.xlu0 %v312_v11, %s687_s8  ;;  %438 = vmatprep.subr.bf16.mxu0 %v686_v0 }
  0x1c   : > { %439 = vmatpush1.bf16.msra.mxu0 %v655_v13 }
  0x1d   : > { %316 = vrot.lane.b32.xlu0 %v649_v3, %s687_s8  ;;  %440 = vmatprep.subr.bf16.mxu0 %v686_v0  ;;  %s294_s8 = scalar_lea.vmem %s800_s4, %s604_s21 }
  0x20   : > { %441 = vmatpush1.bf16.msra.mxu0 %v656_v14 }
  0x21   : > { %442 = vmatprep.subr.bf16.mxu0 %v686_v0 }
  0x24   : > { %443 = vmatpush1.bf16.msra.mxu0 %v657_v15 }
  0x25   : > { %444 = vmatprep.subr.bf16.mxu0 %v686_v0 }
  0x28   : > { %445 = vmatpush1.bf16.msra.mxu0 %v658_v16 }
  0x29   : > { %446 = vmatprep.subr.bf16.mxu0 %v686_v0 }
  0x2c   : > { %447 = vmatpush1.bf16.msra.mxu0 %v659_v17 }
  0x2d   : > { %448 = vmatprep.subr.bf16.mxu0 %v686_v0 }
  0x30   : > { %449 = vmatpush1.bf16.msra.mxu0 %v660_v18 }
  0x31   : > { %450 = vmatprep.subr.bf16.mxu0 %v686_v0 }
  0x34   : > { %451 = vmatpush1.bf16.msra.mxu0 %v661_v19 }
  0x8b   : > { %v315_v20 = vpop.permute.xlu0 %314 }
  0x8f   : > { %v317_v21 = vpop.permute.xlu0 %316 }
  0x90   : > { %620 = vmatprep.mubr.msk.bf16.mxu0 %vm318_vm3, %v317_v21  ;;  %v321_v22 = vsel %vm318_vm3, %v315_v20, %v317_v21 }
  0x91   : > { %461 = vmatmul.mubr.bf16.vlgmr.msra.gmra.mrb[0].mxu0 %v321_v22 }
 0x164   : > { %v462_v24 = vpop.f32.mrb[0].mxu0 }
 0x165   : > { %v463_v25 = vadd.f32 %v607_v23, %v462_v24  ;;  %v464_v26 = vpop.f32.mrb[1].mxu0 }
 0x166   : > { %v465_v27 = vpop.f32.mrb[2].mxu0 }
 0x167   : > { %v468_v28 = vpack.c.bf16 %v463_v25, %v463_v25  ;;  %v466_v29 = vpop.f32.mrb[3].mxu0 }
 0x169   : > { %469 = vst [vmem:[%s294_s8] sm:$0xf] %v468_v28 }
 0x16a PF: > { %s14_s17 = sadd.s32 1, %s684_s17   ;;  %s801_s15 = smov %s680_s16 }
 0x16b   : > { %p11_p5 = scmp.ge.s32.totalorder %s14_s17, 4   ;;  %s802_s16 = smov %s804_s18 }
 0x16d   :  { %13 = sbr.rel (!%p11_p5) target bundleno = 2 (0x2), region = 75 }

// kernel: style_encoder_forward.4
= control target key start
LH: loop header
LB: loop body
LE: loop exit
PB: predicated region body
PF: predicated region fallthrough
CT: control target
= control target key end

     0   :  { %s1194_s18 = smov 0   ;;  %s1196_s19 = smov 0   ;;  %s1319_s0 = inlined_call_operand.vmem [shape: bf16[2,66,3], index: 0, kind: input, shape index: {}]   ;;  %s1320_s1 = inlined_call_operand.vmem [shape: bf16[2,1,2,3], index: 1, kind: input, shape index: {}]   ;;  %s1321_s2 = inlined_call_operand.vmem [shape: bf16[9,16], index: 2, kind: input, shape index: {}]   ;;  %s1322_s3 = inlined_call_operand.vmem [shape: f32[1,16], index: 3, kind: input, shape index: {}]   ;;  %s1323_s4 = inlined_call_operand.vmem [shape: bf16[2,64,16], index: 4, kind: output, shape index: {0}]   ;;  %s1324_s5 = inlined_call_operand.vmem [shape: bf16[2,64,16], index: 5, kind: output, shape index: {1}]  }
   0x1   :  { %s1198_s20 = smov 0  }
   0x2 LB: > { %s35_s21 = sadd.s32 1, %s1153_s19  ;;  %p1018_p0 = scmp.ge.s32.totalorder %s1157_s20, 1  ;;  %s1157_s20 = sphi %s1198_s20, %s16_s20   ;;  %s1153_s19 = sphi %s1196_s19, %s1326_s19   ;;  %s1149_s18 = sphi %s1194_s18, %s1325_s18  }
   0x3   : > { %p37_p1 = scmp.ge.s32.totalorder %s35_s21, 2  ;;  %p262_p2 = scmp.lt.s32.totalorder %s1157_s20, 3 }
   0x5   : > { %s1328_s21 = smov (%p37_p1, %s35_s21), 0  ;;  %p263_p3 = pnand %p1018_p0, %p262_p2 }
   0x6   : > { %p335_p4 = scmp.lt.s32.totalorder (!%p263_p3), %s1149_s18, 1  ;;  %v454_v0 = vlaneseq (!%p263_p3)  ;;  %v1159_v1 = vmov (!%p263_p3), 1966171168   ;;  %v1126_v4 = vld [vmem:[%s1321_s2] sm:$0x1f] (!%p263_p3)   ;;  %vm561_vm0 = vcmask (!%p263_p3), 1043456  }
   0x7   : > { %266 = sbr.rel (%p263_p3) target bundleno = 385 (0x181), region = 36  ;;  %v452_v2 = vunpack.c.l.s4 (!%p263_p3), %v1159_v1  ;;  %vm562_vm1 = vcmask (!%p263_p3), 1044480   ;;  %v1160_v6 = vmov (!%p263_p3), 65535   ;;  %vm417_vm2 = vsmask.f32 (!%p263_p3), 7424  ;;  %s1161_s6 = smov (!%p263_p3), 6  }
   0x8   : > { %v455_v3 = vshrl.u32 (!%p263_p3), %v454_v0, 7  ;;  %v563_v7 = vsel (!%p263_p3), %vm561_vm0, 4294967295, %v1160_v6  ;;  %vm473_vm3 = vcmask (!%p263_p3), 1046528   ;;  %vm470_vm4 = vcmask (!%p263_p3), 1047552   ;;  %s1162_s7 = smov (!%p263_p3), 3  }
   0x9   : > { %v453_v5 = vunpack.c.0.s8 (!%p263_p3), %v452_v2  ;;  %v564_v9 = vsel (!%p263_p3), %vm562_vm1, %v563_v7, 0  ;;  %vm471_vm5 = vmand (!%p263_p3), %vm470_vm4, %vm417_vm2  ;;  %vm520_vm6 = vcmask (!%p263_p3), 23552   ;;  %vm529_vm7 = vcmask (!%p263_p3), 48128  }
   0xa   : > { %v566_v12 = vand.u32 (!%p263_p3), %v1126_v4, %v564_v9  ;;  %vm552_vm8 = vcmask (!%p263_p3), 72704   ;;  %vm665_vm9 = vcmask (!%p263_p3), 125952  }
   0xb   : > { %v456_v10 = vsub.s32 (!%p263_p3), %v453_v5, %v455_v3  ;;  %v1163_v5 = vmov (!%p263_p3), 0.0|0.0  }
   0xc   : > { %1079 = vmatprep.subr.bf16.mxu0 (!%p263_p3), %v566_v12  ;;  %1089 = vmatprep.subr.bf16.mxu1 (!%p263_p3), %v566_v12  ;;  %v1054_v6 = vcombine.low (!%p263_p3), %v1163_v5, %v1163_v5  ;;  %v1055_v7 = vcombine.high (!%p263_p3), %v1163_v5, %v1163_v5 }
   0xd   : > { %1080 = vmatpush3.bf16.msra.mxu0 (!%p263_p3), %v566_v12  ;;  %1090 = vmatpush3.bf16.msra.mxu1 (!%p263_p3), %v566_v12 }
   0xe   : > { %s1330_s18 = smov (!%p335_p4, %s1149_s18), 1 }
   0xf   : > { %s1091_s24 = smul.u32 36, %s1330_s18  ;;  %s353_s27 = scalar_lea.vmem %s1320_s1, %s1330_s18 }
  0x10   : > { %v396_v8 = vld [vmem:[%s353_s27] sm:$0x1]  ;;  %s1060_s8 = sshll.u32 %s1330_s18, 5 }
  0x11   : > { %s342_s30 = scalar_lea.vmem %s1319_s0, %s1091_s24  ;;  %v481_v11 = vcombine.low %v396_v8, %v396_v8  ;;  %v457_v15 = vrot.slane %v396_v8, %v456_v10  ;;  %s1268_s11 = scalar_lea.vmem %s1324_s5, %s1060_s8  ;;  %v1028_v8 = vld [vmem:[%s1322_s3] ss:$0 sm:$0xff] }
  0x12   : > { %v1225_v13 = vld [vmem:[%s342_s30] sm:$0xff]   ;;  %v1227_v14 = vld [vmem:[%s342_s30 + $0x8] sm:$0xff]   ;;  %v1229_v16 = vld [vmem:[%s342_s30 + $0x10] sm:$0xff]   ;;  %809 = vst.msk [vmem:[%s1268_s11 + $0x10] sm:$0xf] %vm665_vm9, %v1054_v6  ;;  %s1284_s16 = scalar_lea.vmem %s1323_s4, %s1060_s8 }
  0x13   : > { %v488_v17 = vrot.slane %v481_v11, %v456_v10  ;;  %v419_v18 = vshrl.u32 %v1225_v13, 16  ;;  %v421_v19 = vshll.u32 %v1225_v13, 16  ;;  %v426_v20 = vshll.u32 %v1227_v14, 16  ;;  %v1124_v28 = vld [vmem:[%s342_s30 + $0x18] sm:$0xff]   ;;  %810 = vst.msk [vmem:[%s1268_s11 + $0x14] sm:$0xf] %vm665_vm9, %v1055_v7 }
  0x14   : > { %v474_v21 = vrot.slane %v1225_v13, 1  ;;  %v475_v22 = vrot.slane %v1227_v14, 1  ;;  %v430_v23 = vshrl.u32 %v1227_v14, 16  ;;  %v434_v24 = vshll.u32 %v1229_v16, 16  ;;  %811 = vst.msk [vmem:[%s1268_s11 + $0x18] sm:$0xf] %vm665_vm9, %v1054_v6 }
  0x15   : > { %v477_v25 = vrot.slane %v1229_v16, 1  ;;  %v423_v26 = vrot.slane %v421_v19, 1  ;;  %v428_v27 = vrot.slane %v426_v20, 1  ;;  %v464_v29 = vrot.slane %v457_v15, %v456_v10  ;;  %812 = vst.msk [vmem:[%s1268_s11 + $0x1c] sm:$0xf] %vm665_vm9, %v1055_v7 }
  0x16   : > { %v476_v30 = vsel %vm473_vm3, %v474_v21, %v475_v22  ;;  %v436_v31 = vrot.slane %v434_v24, 1  ;;  %v438_v32 = vshrl.u32 %v1229_v16, 16  ;;  %v489_v33 = vcombine.low %v488_v17, %v488_v17 }
  0x17   : > { %v424_v34 = vor.u32 %v423_v26, %v419_v18  ;;  %512 = vrot.lane.b32.xlu1 %v476_v30, %s1161_s6  ;;  %v432_v35 = vor.u32 %v430_v23, %v428_v27  ;;  %v442_v36 = vshll.u32 %v1124_v28, 16  ;;  %v446_v37 = vshrl.u32 %v1124_v28, 16 }
  0x18   : > { %v478_v38 = vsel %vm473_vm3, %v475_v22, %v477_v25  ;;  %v466_v39 = vshll.u32 %v464_v29, 16  ;;  %v496_v40 = vrot.slane %v489_v33, %v456_v10  ;;  %v440_v45 = vor.u32 %v438_v32, %v436_v31 }
  0x19   : > { %v429_v41 = vsel %vm417_vm2, %v424_v34, %v428_v27  ;;  %v444_v42 = vrot.slane %v442_v36, 1  ;;  %v437_v44 = vsel %vm417_vm2, %v432_v35, %v436_v31  ;;  %v479_v47 = vrot.slane %v1124_v28, 1 }
  0x1a   : > { %503 = vrot.lane.b32.xlu0 %v429_v41, %s1162_s7  ;;  %v468_v43 = vrot.slane %v466_v39, 1  ;;  %v497_v48 = vcombine.low %v496_v40, %v496_v40 }
  0x1b   : > { %514 = vrot.lane.b32.xlu1 %v478_v38, %s1161_s6  ;;  %v448_v46 = vor.u32 %v446_v37, %v444_v42  ;;  %v445_v50 = vsel %vm417_vm2, %v440_v45, %v444_v42  ;;  %v480_v52 = vsel %vm473_vm3, %v477_v25, %v479_v47 }
  0x1c   : > { %v501_v51 = vsel %vm473_vm3, %v479_v47, %v497_v48 }
  0x1d   : > { %v472_v49 = vsel %vm471_vm5, %v448_v46, %v468_v43 }
  0x1e   : > { %505 = vrot.lane.b32.xlu0 %v437_v44, %s1162_s7 }
  0x1f   : > { %509 = vrot.lane.b32.xlu1 %v472_v49, %s1162_s7 }
  0x22   : > { %507 = vrot.lane.b32.xlu0 %v445_v50, %s1162_s7 }
  0x23   : > { %518 = vrot.lane.b32.xlu1 %v501_v51, %s1161_s6 }
  0x26   : > { %516 = vrot.lane.b32.xlu0 %v480_v52, %s1161_s6 }
  0x89   : > { %v513_v53 = vpop.permute.xlu1 %512 }
  0x8c   : > { %v504_v54 = vpop.permute.xlu0 %503 }
  0x8d   : > { %v522_v55 = vsel %vm520_vm6, %v1225_v13, %v504_v54  ;;  %v515_v56 = vpop.permute.xlu1 %514 }
  0x8e   : > { %v531_v57 = vsel %vm529_vm7, %v522_v55, %v513_v53 }
  0x8f   : > { %1081 = vmatprep.mubr.msk.bf16.mxu0 %vm552_vm8, %v531_v57 }
  0x90   : > { %v506_v58 = vpop.permute.xlu0 %505 }
  0x91   : > { %v524_v59 = vsel %vm520_vm6, %v1227_v14, %v506_v58  ;;  %v510_v60 = vpop.permute.xlu1 %509 }
  0x92   : > { %v533_v61 = vsel %vm529_vm7, %v524_v59, %v515_v56  ;;  %v528_v63 = vsel %vm520_vm6, %v1124_v28, %v510_v60 }
  0x93   : > { %1082 = vmatmul.mubr.msk.bf16.vlgmr.msra.gmra.mrb[0].mxu0 %vm552_vm8, %v533_v61 }
  0x94   : > { %v508_v62 = vpop.permute.xlu0 %507 }
  0x95   : > { %v519_v0 = vpop.permute.xlu1 %518  ;;  %v526_v1 = vsel %vm520_vm6, %v1229_v16, %v508_v62 }
  0x96   : > { %v537_v3 = vsel %vm529_vm7, %v528_v63, %v519_v0 }
  0x98   : > { %v517_v2 = vpop.permute.xlu0 %516 }
  0x99   : > { %v535_v4 = vsel %vm529_vm7, %v526_v1, %v517_v2 }
  0x9a   : > { %1085 = vmatprep.mubr.msk.bf16.mxu1 %vm552_vm8, %v535_v4 }
  0x9b   : > { %1086 = vmatmul.mubr.msk.bf16.vlgmr.msra.gmra.mrb[0].mxu1 %vm552_vm8, %v537_v3 }
 0x166   : > { %v1083_v9 = vpop.f32.mrb[0].mxu0 }
 0x167   : > { %v611_v10 = vadd.f32 %v1083_v9, %v1028_v8  ;;  %v602_v11 = vpop.f32.mrb[1].mxu0 }
 0x168   : > { %v603_v12 = vadd.f32 %v1028_v8, %v602_v11  ;;  %v1084_v13 = vpop.f32.mrb[2].mxu0 }
 0x169   : > { %v1064_v14 = vpack.c.bf16 %v611_v10, %v611_v10  ;;  %v676_v15 = vmin.f32 %v611_v10, 0.0  ;;  %v614_v16 = vadd.f32 %v1084_v13, %v1028_v8  ;;  %v605_v17 = vpop.f32.mrb[3].mxu0  ;;  %vm708_vm10 = vcmp.gt.f32.partialorder %v611_v10, 0.0 }
 0x16a   : > { %v1062_v18 = vpack.c.bf16 %v603_v12, %v603_v12  ;;  %v674_v19 = vmin.f32 %v603_v12, 0.0  ;;  %v606_v20 = vadd.f32 %v1028_v8, %v605_v17  ;;  %vm706_vm11 = vcmp.gt.f32.partialorder %v603_v12, 0.0 }
 0x16b   : > { %668 = vst.msk [vmem:[%s1284_s16 + $0x8] sm:$0xf] %vm665_vm9, %v1064_v14  ;;  %v686_v21 = vmul.f32 1.442695, %v676_v15  ;;  %v1065_v22 = vpack.c.bf16 %v614_v16, %v614_v16  ;;  %v677_v23 = vmin.f32 %v614_v16, 0.0  ;;  %vm709_vm12 = vcmp.gt.f32.partialorder %v614_v16, 0.0 }
 0x16c   : > { %666 = vst.msk [vmem:[%s1284_s16] sm:$0xf] %vm665_vm9, %v1062_v18  ;;  %v682_v24 = vmul.f32 1.442695, %v674_v19  ;;  %v1063_v25 = vpack.c.bf16 %v606_v20, %v606_v20  ;;  %v675_v26 = vmin.f32 %v606_v20, 0.0  ;;  %vm707_vm13 = vcmp.gt.f32.partialorder %v606_v20, 0.0 }
 0x16d   : > { %1127 = vpow2.f32 %v686_v21  ;;  %669 = vst.msk [vmem:[%s1284_s16 + $0xc] sm:$0xf] %vm665_vm9, %v1065_v22  ;;  %v688_v27 = vmul.f32 1.442695, %v677_v23 }
 0x16e   : > { %1129 = vpow2.f32 %v682_v24  ;;  %667 = vst.msk [vmem:[%s1284_s16 + $0x4] sm:$0xf] %vm665_vm9, %v1063_v25  ;;  %v684_v28 = vmul.f32 1.442695, %v675_v26  ;;  %v1087_v29 = vpop.f32.mrb[0].mxu1 }
 0x16f   : > { %1131 = vpow2.f32 %v688_v27  ;;  %v627_v30 = vadd.f32 %v1087_v29, %v1028_v8  ;;  %v618_v31 = vpop.f32.mrb[1].mxu1 }
 0x170   : > { %1133 = vpow2.f32 %v684_v28  ;;  %v619_v32 = vadd.f32 %v1028_v8, %v618_v31  ;;  %v1088_v33 = vpop.f32.mrb[2].mxu1 }
 0x171   : > { %v1068_v34 = vpack.c.bf16 %v627_v30, %v627_v30  ;;  %v630_v35 = vadd.f32 %v1088_v33, %v1028_v8  ;;  %v621_v36 = vpop.f32.mrb[3].mxu1 }
 0x172   : > { %v1066_v37 = vpack.c.bf16 %v619_v32, %v619_v32  ;;  %v622_v38 = vadd.f32 %v1028_v8, %v621_v36 }
 0x173   : > { %672 = vst.msk [vmem:[%s1284_s16 + $0x18] sm:$0xf] %vm665_vm9, %v1068_v34  ;;  %v1069_v39 = vpack.c.bf16 %v630_v35, %v630_v35 }
 0x174   : > { %670 = vst.msk [vmem:[%s1284_s16 + $0x10] sm:$0xf] %vm665_vm9, %v1066_v37  ;;  %v1067_v40 = vpack.c.bf16 %v622_v38, %v622_v38 }
 0x175   : > { %673 = vst.msk [vmem:[%s1284_s16 + $0x1c] sm:$0xf] %vm665_vm9, %v1069_v39 }
 0x176   : > { %671 = vst.msk [vmem:[%s1284_s16 + $0x14] sm:$0xf] %vm665_vm9, %v1067_v40 }
 0x177   : > { %v1128_v41 = vpop.eup %1127 }
 0x178   : > { %v1130_v42 = vpop.eup %1129  ;;  %v1044_v43 = vadd.f32 -1.0, %v1128_v41 }
 0x179   : > { %v1132_v44 = vpop.eup %1131  ;;  %v1042_v45 = vadd.f32 -1.0, %v1130_v42 }
 0x17a   : > { %v1134_v46 = vpop.eup %1133  ;;  %v716_v47 = vsel %vm708_vm10, %v611_v10, %v1044_v43  ;;  %v1045_v48 = vadd.f32 -1.0, %v1132_v44 }
 0x17b   : > { %v1072_v49 = vpack.c.bf16 %v716_v47, %v716_v47  ;;  %v714_v50 = vsel %vm706_vm11, %v603_v12, %v1042_v45  ;;  %v1043_v51 = vadd.f32 -1.0, %v1134_v46 }
 0x17c   : > { %v1070_v52 = vpack.c.bf16 %v714_v50, %v714_v50  ;;  %v717_v53 = vsel %vm709_vm12, %v614_v16, %v1045_v48 }
 0x17d   : > { %807 = vst.msk [vmem:[%s1268_s11 + $0x8] sm:$0xf] %vm665_vm9, %v1072_v49  ;;  %v1073_v54 = vpack.c.bf16 %v717_v53, %v717_v53  ;;  %v715_v55 = vsel %vm707_vm13, %v606_v20, %v1043_v51 }
 0x17e   : > { %805 = vst.msk [vmem:[%s1268_s11] sm:$0xf] %vm665_vm9, %v1070_v52  ;;  %v1071_v56 = vpack.c.bf16 %v715_v55, %v715_v55 }
 0x17f   : > { %808 = vst.msk [vmem:[%s1268_s11 + $0xc] sm:$0xf] %vm665_vm9, %v1073_v54 }
 0x180   : > { %806 = vst.msk [vmem:[%s1268_s11 + $0x4] sm:$0xf] %vm665_vm9, %v1071_v56 }
 0x181 PF: > { %s16_s20 = sadd.s32 1, %s1157_s20   ;;  %s1325_s18 = smov %s1153_s19 }
 0x182   : > { %p13_p5 = scmp.ge.s32.totalorder %s16_s20, 4   ;;  %s1326_s19 = smov %s1328_s21 }
 0x184   :  { %15 = sbr.rel (!%p13_p5) target bundleno = 2 (0x2), region = 87 }

// kernel: style_encoder_forward.5
= control target key start
LH: loop header
LB: loop body
LE: loop exit
PB: predicated region body
PF: predicated region fallthrough
CT: control target
= control target key end

     0   :  { %s947_s18 = smov 0   ;;  %s949_s19 = smov 0   ;;  %s1017_s0 = inlined_call_operand.vmem [shape: bf16[2,32,32], index: 0, kind: input, shape index: {}]   ;;  %s1018_s1 = inlined_call_operand.vmem [shape: bf16[2,1,1,32], index: 1, kind: input, shape index: {}]   ;;  %s1019_s2 = inlined_call_operand.vmem [shape: bf16[48,32], index: 2, kind: input, shape index: {}]   ;;  %s1020_s3 = inlined_call_operand.vmem [shape: f32[1,32], index: 3, kind: input, shape index: {}]   ;;  %s1021_s4 = inlined_call_operand.vmem [shape: bf16[2,32,32], index: 4, kind: output, shape index: {0}]   ;;  %s1022_s5 = inlined_call_operand.vmem [shape: bf16[2,32,32], index: 5, kind: output, shape index: {1}]  }
   0x1   :  { %s951_s20 = smov 0  }
   0x2 LB: > { %s35_s21 = sadd.s32 1, %s908_s19  ;;  %p801_p0 = scmp.ge.s32.totalorder %s912_s20, 1  ;;  %s912_s20 = sphi %s951_s20, %s16_s20   ;;  %s908_s19 = sphi %s949_s19, %s1024_s19   ;;  %s904_s18 = sphi %s947_s18, %s1023_s18  }
   0x3   : > { %p37_p1 = scmp.ge.s32.totalorder %s35_s21, 2  ;;  %p254_p2 = scmp.lt.s32.totalorder %s912_s20, 3 }
   0x5   : > { %s1026_s21 = smov (%p37_p1, %s35_s21), 0  ;;  %p255_p3 = pnand %p801_p0, %p254_p2 }
   0x6   : > { %p319_p4 = scmp.lt.s32.totalorder (!%p255_p3), %s904_s18, 1  ;;  %v883_v0 = vld [vmem:[%s1019_s2] sm:$0xff] (!%p255_p3)   ;;  %v884_v1 = vld [vmem:[%s1019_s2 + $0x8] sm:$0xff] (!%p255_p3)   ;;  %v885_v2 = vld [vmem:[%s1019_s2 + $0x10] sm:$0xff] (!%p255_p3)   ;;  %vm383_vm0 = vsmask.f32 (!%p255_p3), 256 }
   0x7   : > { %258 = sbr.rel (%p255_p3) target bundleno = 384 (0x180), region = 36  ;;  %844 = vmatprep.subr.bf16.mxu0 (!%p255_p3), %v883_v0  ;;  %vm400_vm1 = vcmask (!%p255_p3), 1040384   ;;  %s914_s10 = smov (!%p255_p3), 112   ;;  %vm412_vm3 = vcmask (!%p255_p3), 130048   ;;  %vm450_vm4 = vcmask (!%p255_p3), 392192   ;;  %v916_v22 = vmov (!%p255_p3), 0.0|0.0  }
   0x8   : > { %845 = vmatpush3.bf16.msra.mxu0 (!%p255_p3), %v883_v0  ;;  %vm401_vm2 = vmand (!%p255_p3), %vm400_vm1, %vm383_vm0  ;;  %s915_s11 = smov (!%p255_p3), 16   ;;  %v826_v23 = vcombine.low (!%p255_p3), %v916_v22, %v916_v22  ;;  %v827_v24 = vcombine.high (!%p255_p3), %v916_v22, %v916_v22  ;;  %vm520_vm5 = vcmask (!%p255_p3), 257024   ;;  %v810_v25 = vld [vmem:[%s1020_s3] ss:$0 sm:$0xff] (!%p255_p3) }
   0x9   : > { %846 = vmatprep.subr.bf16.mxu0 (!%p255_p3), %v884_v1 }
   0xc   : > { %847 = vmatpush3.bf16.msra.mxu0 (!%p255_p3), %v884_v1 }
   0xd   : > { %848 = vmatprep.subr.bf16.mxu0 (!%p255_p3), %v885_v2 }
   0xe   : > { %s1028_s18 = smov (!%p319_p4, %s904_s18), 1 }
   0xf   : > { %s971_s26 = sshll.u32 %s1028_s18, 4  ;;  %s333_s9 = scalar_lea.vmem %s1018_s1, %s1028_s18 }
  0x10   : > { %s326_s6 = scalar_lea.vmem %s1017_s0, %s971_s26  ;;  %849 = vmatpush3.bf16.msra.mxu0 %v885_v2  ;;  %v372_v11 = vld [vmem:[%s333_s9] sm:$0x1]  ;;  %s987_s14 = scalar_lea.vmem %s1022_s5, %s971_s26 }
  0x11   : > { %v881_v3 = vld [vmem:[%s326_s6] sm:$0xff]   ;;  %v882_v4 = vld [vmem:[%s326_s6 + $0x8] sm:$0xff]   ;;  %594 = vst.msk [vmem:[%s987_s14 + $0x8] sm:$0xf] %vm520_vm5, %v826_v23  ;;  %595 = vst.msk [vmem:[%s987_s14 + $0xc] sm:$0xf] %vm520_vm5, %v827_v24  ;;  %s352_s22 = scalar_lea.vmem %s1021_s4, %s971_s26 }
  0x12   : > { %v385_v5 = vshrl.u32 %v881_v3, 16  ;;  %v392_v6 = vshrl.u32 %v882_v4, 16  ;;  %v395_v7 = vshll.u32 %v882_v4, 16  ;;  %v388_v8 = vshll.u32 %v881_v3, 16 }
  0x14   : > { %v387_v9 = vrot.slane %v385_v5, 7  ;;  %v394_v10 = vrot.slane %v392_v6, 7 }
  0x16   : > { %v397_v12 = vor.u32 %v395_v7, %v394_v10  ;;  %v390_v13 = vor.u32 %v388_v8, %v387_v9 }
  0x18   : > { %v398_v14 = vsel %vm383_vm0, %v387_v9, %v397_v12  ;;  %v402_v15 = vsel %vm401_vm2, %v372_v11, %v390_v13 }
  0x19   : > { %406 = vrot.lane.b32.xlu1 %v398_v14, %s914_s10  ;;  %404 = vrot.lane.b32.xlu0 %v402_v15, %s914_s10 }
  0x1d   : > { %410 = vrot.lane.b32.xlu1 %v882_v4, %s915_s11  ;;  %408 = vrot.lane.b32.xlu0 %v881_v3, %s915_s11 }
  0x8b   : > { %v407_v16 = vpop.permute.xlu1 %406  ;;  %v405_v17 = vpop.permute.xlu0 %404 }
  0x8f   : > { %v411_v18 = vpop.permute.xlu1 %410  ;;  %v409_v19 = vpop.permute.xlu0 %408 }
  0x90   : > { %v418_v20 = vsel %vm412_vm3, %v407_v16, %v411_v18  ;;  %v415_v21 = vsel %vm412_vm3, %v405_v17, %v409_v19 }
  0x91   : > { %850 = vmatprep.mubr.msk.bf16.mxu0 %vm450_vm4, %v415_v21 }
  0x92   : > { %851 = vmatmul.mubr.msk.bf16.vlgmr.msra.gmra.mrb[0].mxu0 %vm450_vm4, %v418_v20 }
 0x165   : > { %v852_v26 = vpop.f32.mrb[0].mxu0 }
 0x166   : > { %v498_v27 = vadd.f32 %v852_v26, %v810_v25  ;;  %v489_v28 = vpop.f32.mrb[1].mxu0 }
 0x167   : > { %v490_v29 = vadd.f32 %v810_v25, %v489_v28  ;;  %v853_v30 = vpop.f32.mrb[2].mxu0 }
 0x168   : > { %v835_v31 = vpack.c.bf16 %v498_v27, %v498_v27  ;;  %v501_v32 = vadd.f32 %v853_v30, %v810_v25  ;;  %v492_v33 = vpop.f32.mrb[3].mxu0 }
 0x169   : > { %v833_v34 = vpack.c.bf16 %v490_v29, %v490_v29  ;;  %v525_v35 = vmin.f32 %v490_v29, 0.0  ;;  %v493_v36 = vadd.f32 %v810_v25, %v492_v33  ;;  %vm541_vm6 = vcmp.gt.f32.partialorder %v490_v29, 0.0 }
 0x16a   : > { %523 = vst.msk [vmem:[%s352_s22 + $0x8] sm:$0xf] %vm520_vm5, %v835_v31  ;;  %v836_v37 = vpack.c.bf16 %v501_v32, %v501_v32 }
 0x16b   : > { %521 = vst.msk [vmem:[%s352_s22] sm:$0xf] %vm520_vm5, %v833_v34  ;;  %v529_v38 = vmul.f32 1.442695, %v525_v35  ;;  %v834_v39 = vpack.c.bf16 %v493_v36, %v493_v36  ;;  %v526_v40 = vmin.f32 %v493_v36, 0.0  ;;  %vm542_vm7 = vcmp.gt.f32.partialorder %v493_v36, 0.0 }
 0x16c   : > { %524 = vst.msk [vmem:[%s352_s22 + $0xc] sm:$0xf] %vm520_vm5, %v836_v37 }
 0x16d   : > { %886 = vpow2.f32 %v529_v38  ;;  %522 = vst.msk [vmem:[%s352_s22 + $0x4] sm:$0xf] %vm520_vm5, %v834_v39  ;;  %v531_v41 = vmul.f32 1.442695, %v526_v40 }
 0x16f   : > { %888 = vpow2.f32 %v531_v41 }
 0x177   : > { %v887_v42 = vpop.eup %886 }
 0x178   : > { %v820_v43 = vadd.f32 -1.0, %v887_v42 }
 0x179   : > { %v889_v44 = vpop.eup %888 }
 0x17a   : > { %v545_v45 = vsel %vm541_vm6, %v490_v29, %v820_v43  ;;  %v821_v46 = vadd.f32 -1.0, %v889_v44 }
 0x17b   : > { %v837_v47 = vpack.c.bf16 %v545_v45, %v545_v45 }
 0x17c   : > { %v546_v48 = vsel %vm542_vm7, %v493_v36, %v821_v46 }
 0x17d   : > { %592 = vst.msk [vmem:[%s987_s14] sm:$0xf] %vm520_vm5, %v837_v47  ;;  %v838_v49 = vpack.c.bf16 %v546_v48, %v546_v48 }
 0x17f   : > { %593 = vst.msk [vmem:[%s987_s14 + $0x4] sm:$0xf] %vm520_vm5, %v838_v49 }
 0x180 PF: > { %s16_s20 = sadd.s32 1, %s912_s20   ;;  %s1023_s18 = smov %s908_s19 }
 0x181   : > { %p13_p5 = scmp.ge.s32.totalorder %s16_s20, 4   ;;  %s1024_s19 = smov %s1026_s21 }
 0x183   :  { %15 = sbr.rel (!%p13_p5) target bundleno = 2 (0x2), region = 87 }

// kernel: style_encoder_forward.6
= control target key start
LH: loop header
LB: loop body
LE: loop exit
PB: predicated region body
PF: predicated region fallthrough
CT: control target
= control target key end

     0   :  { %s900_s18 = smov 0   ;;  %s902_s19 = smov 0   ;;  %s969_s0 = inlined_call_operand.vmem [shape: bf16[2,16,64], index: 0, kind: input, shape index: {}]   ;;  %s970_s1 = inlined_call_operand.vmem [shape: bf16[2,1,1,64], index: 1, kind: input, shape index: {}]   ;;  %s971_s2 = inlined_call_operand.vmem [shape: bf16[96,64], index: 2, kind: input, shape index: {}]   ;;  %s972_s3 = inlined_call_operand.vmem [shape: f32[1,64], index: 3, kind: input, shape index: {}]   ;;  %s973_s4 = inlined_call_operand.vmem [shape: bf16[2,16,64], index: 4, kind: output, shape index: {0}]   ;;  %s974_s5 = inlined_call_operand.vmem [shape: bf16[2,16,64], index: 5, kind: output, shape index: {1}]  }
   0x1   :  { %s904_s20 = smov 0  }
   0x2 LB: > { %s35_s21 = sadd.s32 1, %s859_s19  ;;  %p749_p0 = scmp.ge.s32.totalorder %s863_s20, 1  ;;  %s863_s20 = sphi %s904_s20, %s16_s20   ;;  %s859_s19 = sphi %s902_s19, %s976_s19   ;;  %s855_s18 = sphi %s900_s18, %s975_s18  }
   0x3   : > { %p37_p1 = scmp.ge.s32.totalorder %s35_s21, 2  ;;  %p254_p2 = scmp.lt.s32.totalorder %s863_s20, 3 }
   0x5   : > { %s978_s21 = smov (%p37_p1, %s35_s21), 0  ;;  %p255_p3 = pnand %p749_p0, %p254_p2 }
   0x6   : > { %p319_p4 = scmp.lt.s32.totalorder (!%p255_p3), %s855_s18, 1  ;;  %v865_v0 = vmov (!%p255_p3), 0.0   ;;  %v833_v1 = vld [vmem:[%s971_s2] sm:$0xff] (!%p255_p3)   ;;  %v834_v2 = vld [vmem:[%s971_s2 + $0x8] sm:$0xff] (!%p255_p3)   ;;  %vm866_vm0 = vmmov (!%p255_p3), 0   ;;  %vm384_vm2 = vcmask (!%p255_p3), 1040384  }
   0x7   : > { %258 = sbr.rel (%p255_p3) target bundleno = 380 (0x17c), region = 36  ;;  %787 = vmatprep.subr.bf16.mxu0 (!%p255_p3), %v865_v0  ;;  %799 = vmatprep.mubr.msk.bf16.mxu0 (!%p255_p3), %vm866_vm0, %v865_v0  ;;  %vm385_vm1 = vsmask.f32 (!%p255_p3), 256  ;;  %v835_v6 = vld [vmem:[%s971_s2 + $0x10] sm:$0xff] (!%p255_p3)   ;;  %v836_v10 = vld [vmem:[%s971_s2 + $0x18] sm:$0xff] (!%p255_p3)   ;;  %s867_s12 = smov (!%p255_p3), 96  }
   0x8   : > { %788 = vmatpush3.bf16.msra.mxu0 (!%p255_p3), %v833_v1  ;;  %vm386_vm3 = vmand (!%p255_p3), %vm384_vm2, %vm385_vm1  ;;  %v837_v12 = vld [vmem:[%s971_s2 + $0x20] sm:$0xff] (!%p255_p3)   ;;  %s868_s15 = smov (!%p255_p3), 32   ;;  %v838_v13 = vld [vmem:[%s971_s2 + $0x28] sm:$0xff] (!%p255_p3)   ;;  %vm393_vm4 = vcmask (!%p255_p3), 261120   ;;  %vm452_vm5 = vcmask (!%p255_p3), 785408   ;;  %vm504_vm6 = vcmask (!%p255_p3), 519168  }
   0x9   : > { %789 = vmatprep.subr.bf16.mxu0 (!%p255_p3), %v865_v0  ;;  %v869_v17 = vmov (!%p255_p3), 0.0|0.0   ;;  %v757_v18 = vld [vmem:[%s972_s3] ss:$0 sm:$0xff] (!%p255_p3) }
   0xc   : > { %790 = vmatpush3.bf16.msra.mxu0 (!%p255_p3), %v834_v2 }
   0xd   : > { %791 = vmatprep.subr.bf16.mxu0 (!%p255_p3), %v865_v0 }
   0xe   : > { %s980_s18 = smov (!%p319_p4, %s855_s18), 1 }
   0xf   : > { %s921_s24 = sshll.u32 %s980_s18, 3  ;;  %s333_s7 = scalar_lea.vmem %s970_s1, %s980_s18 }
  0x10   : > { %s326_s29 = scalar_lea.vmem %s969_s0, %s921_s24  ;;  %v370_v8 = vld [vmem:[%s333_s7] sm:$0x1]  ;;  %792 = vmatpush3.bf16.msra.mxu0 %v835_v6  ;;  %s365_s23 = scalar_lea.vmem %s974_s5, %s921_s24 }
  0x11   : > { %v832_v3 = vld [vmem:[%s326_s29] sm:$0xff]   ;;  %793 = vmatprep.subr.bf16.mxu0 %v865_v0  ;;  %543 = vst.msk [vmem:[%s365_s23 + $0x4] sm:$0xf] %vm504_vm6, %v869_v17  ;;  %s352_s29 = scalar_lea.vmem %s973_s4, %s921_s24 }
  0x12   : > { %v377_v4 = vshrl.u32 %v832_v3, 16  ;;  %v380_v5 = vshll.u32 %v832_v3, 16 }
  0x14   : > { %v379_v7 = vrot.slane %v377_v4, 7  ;;  %794 = vmatpush3.bf16.msra.mxu0 %v836_v10 }
  0x15   : > { %795 = vmatprep.subr.bf16.mxu0 %v865_v0 }
  0x16   : > { %v382_v9 = vor.u32 %v380_v5, %v379_v7 }
  0x18   : > { %v387_v11 = vsel %vm386_vm3, %v370_v8, %v382_v9  ;;  %796 = vmatpush3.bf16.msra.mxu0 %v837_v12 }
  0x19   : > { %389 = vrot.lane.b32.xlu0 %v387_v11, %s867_s12  ;;  %797 = vmatprep.subr.bf16.mxu0 %v865_v0 }
  0x1c   : > { %798 = vmatpush3.bf16.msra.mxu0 %v838_v13 }
  0x1d   : > { %391 = vrot.lane.b32.xlu0 %v832_v3, %s868_s15 }
  0x8b   : > { %v390_v14 = vpop.permute.xlu0 %389 }
  0x8f   : > { %v392_v15 = vpop.permute.xlu0 %391 }
  0x90   : > { %v396_v16 = vsel %vm393_vm4, %v390_v14, %v392_v15 }
  0x91   : > { %800 = vmatmul.mubr.msk.bf16.vlgmr.msra.gmra.mrb[0].mxu0 %vm452_vm5, %v396_v16 }
 0x164   : > { %v489_v19 = vpop.f32.mrb[0].mxu0 }
 0x165   : > { %v490_v20 = vadd.f32 %v757_v18, %v489_v19  ;;  %v801_v21 = vpop.f32.mrb[1].mxu0 }
 0x166   : > { %v492_v22 = vpop.f32.mrb[2].mxu0 }
 0x167   : > { %v776_v23 = vpack.c.bf16 %v490_v20, %v490_v20  ;;  %v507_v24 = vmin.f32 %v490_v20, 0.0  ;;  %v493_v25 = vadd.f32 %v757_v18, %v492_v22  ;;  %v802_v26 = vpop.f32.mrb[3].mxu0  ;;  %vm515_vm7 = vcmp.gt.f32.partialorder %v490_v20, 0.0 }
 0x169   : > { %v509_v27 = vmul.f32 1.442695, %v507_v24  ;;  %v777_v28 = vpack.c.bf16 %v493_v25, %v493_v25  ;;  %505 = vst.msk [vmem:[%s352_s29] sm:$0xf] %vm504_vm6, %v776_v23 }
 0x16b   : > { %839 = vpow2.f32 %v509_v27  ;;  %506 = vst.msk [vmem:[%s352_s29 + $0x4] sm:$0xf] %vm504_vm6, %v777_v28 }
 0x175   : > { %v840_v29 = vpop.eup %839 }
 0x176   : > { %v767_v30 = vadd.f32 -1.0, %v840_v29 }
 0x178   : > { %v517_v31 = vsel %vm515_vm7, %v490_v20, %v767_v30 }
 0x179   : > { %v778_v32 = vpack.c.bf16 %v517_v31, %v517_v31 }
 0x17b   : > { %542 = vst.msk [vmem:[%s365_s23] sm:$0xf] %vm504_vm6, %v778_v32 }
 0x17c PF: > { %s16_s20 = sadd.s32 1, %s863_s20   ;;  %s975_s18 = smov %s859_s19 }
 0x17d   : > { %p13_p5 = scmp.ge.s32.totalorder %s16_s20, 4   ;;  %s976_s19 = smov %s978_s21 }
 0x17f   :  { %15 = sbr.rel (!%p13_p5) target bundleno = 2 (0x2), region = 87 }

</bundles_post_ra>
